<compile_context>
chip_gen: v5e
topology: v5e:2x2
jax: 0.10.0
libtpu: 0.0.40
codegen_flags: <defaults>
</compile_context>

<pallas_src>
import functools

import jax
import jax.numpy as jnp
from jax.experimental import pallas as pl
from jax.experimental.pallas import tpu as pltpu

POOL = 8   # SMFA.down_scale
PACK = 4   # spatial positions packed into lanes (packed lane width = PACK*C)


def _erf(x):
    # float32-accurate polynomial erf (Abramowitz & Stegun 7.1.26,
    # |err| < 1.5e-7), matching nn.GELU()'s exact erf to float32 noise.
    a1, a2, a3, a4, a5 = (0.254829592, -0.284496736, 1.421413741,
                          -1.453152027, 1.061405429)
    p = 0.3275911
    ax = jnp.abs(x)
    # EUP approximate reciprocal: the EUP slot is otherwise idle here and the
    # approximation error (~1e-4 rel) is negligible for the erf polynomial.
    t = pl.reciprocal(1.0 + p * ax, approx=True)
    poly = ((((a5 * t + a4) * t + a3) * t + a2) * t + a1) * t
    y = 1.0 - poly * jnp.exp(-ax * ax)
    return jnp.where(x >= 0.0, y, -y)


def _gelu_exact(x):
    return 0.5 * x * (1.0 + _erf(x * 0.7071067811865476))


def _group_reduce_lanes(v, C, op):
    # v: (rows, PACK*C).  Combine the PACK lane-groups (each group = one packed
    # spatial position) with `op` via XLU lane rotations; every lane group of
    # the result holds the combined value (group-replicated).  PACK == 4.
    r = op(v, pltpu.roll(v, shift=C, axis=1))
    return op(r, pltpu.roll(r, shift=2 * C, axis=1))


def smfa_kernel(f_ref, wy_ref, by_ref, wx_ref, bx_ref, wdw_ref, bdw_ref,
                w1_ref, b1_ref, w2_ref, b2_ref, alpha_ref, belt_ref, o_ref,
                *, H, W, C, mm_dtype):
    hs, ws = H // POOL, W // POOL
    n = H * W
    C4 = PACK * C
    rows = n // PACK

    f = f_ref[...]                                             # (rows, C4) f32
    fm = f.astype(mm_dtype)

    # linear_0, split into its two halves (y_d branch / x branch).  Weights are
    # block-diagonal (C4, C4) so each lane group gets its own 1x1 conv.
    y_d = jnp.dot(fm, wy_ref[...], preferred_element_type=jnp.float32) + by_ref[...]
    x = jnp.dot(fm, wx_ref[...], preferred_element_type=jnp.float32) + bx_ref[...]

    # ---- adaptive_max_pool2d to (hs, ws): exact 8x8 pooling ----------------
    # per-lane-group spatial max inside every 8x8 block (grouped reshape+max),
    # then a lane-group max (pltpu.roll) to cover all PACK positions per row.
    h1 = x.reshape(hs, POOL, W // PACK, C4).max(axis=1)        # height rows
    h2 = h1.reshape(hs, ws, POOL // PACK, C4).max(axis=2)      # width quads
    pooled = _group_reduce_lanes(h2.reshape(hs * ws, C4), C, jnp.maximum)
    pooled = pooled.reshape(hs, ws, C4)                        # group-replicated

    # ---- per-channel spatial variance (two-pass, unbiased, f32) ------------
    sx = jnp.sum(x, axis=0, keepdims=True)                     # (1, C4)
    mean = _group_reduce_lanes(sx, C, jnp.add) * (1.0 / n)     # group-replicated
    cen = x - mean
    svv = jnp.sum(cen * cen, axis=0, keepdims=True)            # (1, C4)
    x_v = _group_reduce_lanes(svv, C, jnp.add) * (1.0 / (n - 1))

    # ---- depthwise 3x3 conv (pad 1) on the tiny pooled map -----------------
    # TODO(synk): at large hs*ws replace the concat-pad + shifted slices with
    # pltpu.roll shifts + boundary masks (rides the idle XLU slot); negligible
    # at hs = ws = 2.
    zc = jnp.zeros((hs, 1, C4), jnp.float32)
    zr = jnp.zeros((1, ws + 2, C4), jnp.float32)
    pad = jnp.concatenate(
        [zr, jnp.concatenate([zc, pooled, zc], axis=1), zr], axis=0)
    wdw = wdw_ref[...]                                         # (9, C4) lane-tiled
    xs = jnp.zeros((hs, ws, C4), jnp.float32) + bdw_ref[...]
    for di in range(3):
        for dj in range(3):
            xs = xs + pad[di:di + hs, dj:dj + ws, :] * wdw[di * 3 + dj]

    # ---- alpha/belt modulation + linear_1 + exact GELU ----------------------
    t = xs * alpha_ref[...] + x_v * belt_ref[...]              # (hs, ws, C4)
    ts = t.reshape(hs * ws, C4).astype(mm_dtype)
    g = _gelu_exact(
        jnp.dot(ts, w1_ref[...], preferred_element_type=jnp.float32) + b1_ref[...])

    # ---- nearest-neighbour upsample back to the packed full-res layout ------
    # Each packed row (4 adjacent width pixels) maps to exactly one pooled
    # pixel, and g is already lane-group replicated, so one broadcast-and-
    # collapse produces the packed upsampled map (no gw/u double intermediate).
    u = jnp.broadcast_to(
        g.reshape(hs, 1, ws, 1, C4),
        (hs, POOL, ws, POOL // PACK, C4)).reshape(rows, C4)

    # ---- y_d + x * upsample(g), then linear_2 (1x1 conv) --------------------
    s = (y_d + x * u).astype(mm_dtype)
    out = jnp.dot(s, w2_ref[...], preferred_element_type=jnp.float32) + b2_ref[...]
    o_ref[...] = out.astype(o_ref.dtype)                       # 128-lane-dense store


def _block_diag4(w):
    # (Cin, Cout) -> (PACK*Cin, PACK*Cout) block-diagonal matrix: per-position
    # 1x1 conv in the lane-packed layout.
    return jnp.kron(jnp.eye(PACK, dtype=w.dtype), w)


def _lane_tile(p):
    # (r, C) -> (r, PACK*C): replicate per-channel parameters across the PACK
    # lane groups.
    return jnp.tile(p, (1, PACK))


def smfa_pallas(f_nchw, params, *, matmul_dtype=jnp.bfloat16):
    B, C, H, W = f_nchw.shape
    assert H % POOL == 0 and W % POOL == 0 and W % PACK == 0
    assert (PACK * C) % 128 == 0, "packed lane width must be a multiple of 128"
    (w0, b0, wdw, bdw, w1, b1, w2, b2, alpha, belt) = params

    n = H * W
    rows = n // PACK
    C4 = PACK * C

    # dropout_rate = 0.0  ->  identity; not materialized.

    # Lane-packed layout: free row-major reshape of the channel-last buffer.
    f_flat = jnp.transpose(f_nchw, (0, 2, 3, 1)).reshape(B, rows, C4)

    # Split linear_0 into y / x halves (kills the lane-slice relayout), then
    # block-diagonalize every 1x1 conv and lane-tile per-channel params.
    # Matmul weights are pre-cast to the MXU operand dtype (bf16 by default).
    wy_bd = _block_diag4(w0[:, :C]).astype(matmul_dtype)
    wx_bd = _block_diag4(w0[:, C:]).astype(matmul_dtype)
    w1_bd = _block_diag4(w1).astype(matmul_dtype)
    w2_bd = _block_diag4(w2).astype(matmul_dtype)
    by_t, bx_t = _lane_tile(b0[:, :C]), _lane_tile(b0[:, C:])
    wdw_t, bdw_t = _lane_tile(wdw), _lane_tile(bdw)
    b1_t, b2_t = _lane_tile(b1), _lane_tile(b2)
    alpha_t, belt_t = _lane_tile(alpha), _lane_tile(belt)

    kernel = functools.partial(smfa_kernel, H=H, W=W, C=C, mm_dtype=matmul_dtype)
    wspec = lambda shape: pl.BlockSpec(shape, lambda b: (0, 0))

    # Explicit scoped-VMEM budget (v5e default is only 16 MiB); grows with the
    # whole-image working set, capped well below v7x's 64 MiB physical VMEM.
    vmem_limit = int(min(56 * 1024 * 1024,
                         max(32 * 1024 * 1024, 24 * rows * C4 * 4)))

    out_flat = pl.pallas_call(
        kernel,
        out_shape=jax.ShapeDtypeStruct((B, rows, C4), jnp.float32),
        grid=(B,),
        in_specs=[
            pl.BlockSpec((None, rows, C4), lambda b: (b, 0, 0)),   # f (packed)
            wspec((C4, C4)), wspec((1, C4)),                       # wy, by
            wspec((C4, C4)), wspec((1, C4)),                       # wx, bx
            wspec((9, C4)), wspec((1, C4)),                        # wdw, bdw
            wspec((C4, C4)), wspec((1, C4)),                       # w1, b1
            wspec((C4, C4)), wspec((1, C4)),                       # w2, b2
            wspec((1, C4)), wspec((1, C4)),                        # alpha, belt
        ],
        out_specs=pl.BlockSpec((None, rows, C4), lambda b: (b, 0, 0)),
        compiler_params=pltpu.CompilerParams(
            dimension_semantics=("parallel",),
            vmem_limit_bytes=vmem_limit),
    )(f_flat, wy_bd, by_t, wx_bd, bx_t, wdw_t, bdw_t,
      w1_bd, b1_t, w2_bd, b2_t, alpha_t, belt_t)

    out = out_flat.reshape(B, H, W, C)                  # packed rows unpack freely
    return jnp.transpose(out, (0, 3, 1, 2))             # back to NCHW


def smfa_ref(f_nchw, params):
    """Plain-JAX reference with identical semantics (for validation)."""
    (w0, b0, wdw, bdw, w1, b1, w2, b2, alpha, belt) = params
    B, C, H, W = f_nchw.shape
    hs, ws = H // POOL, W // POOL
    hi = jax.lax.Precision.HIGHEST
    xin = jnp.transpose(f_nchw, (0, 2, 3, 1))                      # (B, H, W, C)
    z = jnp.einsum('bhwc,cd->bhwd', xin, w0, precision=hi) + b0.reshape(1, 1, 1, 2 * C)
    y_d, x = z[..., :C], z[..., C:]
    pooled = x.reshape(B, hs, POOL, ws, POOL, C).max(axis=(2, 4))
    pad = jnp.pad(pooled, ((0, 0), (1, 1), (1, 1), (0, 0)))
    x_s = jnp.broadcast_to(bdw.reshape(1, 1, 1, C), (B, hs, ws, C))
    for di in range(3):
        for dj in range(3):
            x_s = x_s + pad[:, di:di + hs, dj:dj + ws, :] * wdw[di * 3 + dj].reshape(1, 1, 1, C)
    x_v = jnp.var(x, axis=(1, 2), keepdims=True, ddof=1)
    t = x_s * alpha.reshape(1, 1, 1, C) + x_v * belt.reshape(1, 1, 1, C)
    g = jax.nn.gelu(jnp.einsum('bhwc,cd->bhwd', t, w1, precision=hi)
                    + b1.reshape(1, 1, 1, C), approximate=False)
    u = jnp.repeat(jnp.repeat(g, POOL, axis=1), POOL, axis=2)
    s = y_d + x * u
    out = jnp.einsum('bhwc,cd->bhwd', s, w2, precision=hi) + b2.reshape(1, 1, 1, C)
    return jnp.transpose(out, (0, 3, 1, 2))


if __name__ == "__main__":
    # dim=32 (lane-friendly stand-in for the default 36), B=2, 16x16 spatial.
    B, C, H, W = 2, 32, 16, 16
    key = jax.random.PRNGKey(0)
    ks = jax.random.split(key, 12)
    s = 0.1
    # Parameter shapes follow SMFA.__init__ (1x1 conv weights stored as matmul
    # matrices (C_in, C_out); depthwise 3x3 weights flattened to (9, C)).
    w0 = s * jax.random.normal(ks[0], (C, 2 * C), jnp.float32)
    b0 = s * jax.random.normal(ks[1], (1, 2 * C), jnp.float32)
    wdw = s * jax.random.normal(ks[2], (9, C), jnp.float32)
    bdw = s * jax.random.normal(ks[3], (1, C), jnp.float32)
    w1 = s * jax.random.normal(ks[4], (C, C), jnp.float32)
    b1 = s * jax.random.normal(ks[5], (1, C), jnp.float32)
    w2 = s * jax.random.normal(ks[6], (C, C), jnp.float32)
    b2 = s * jax.random.normal(ks[7], (1, C), jnp.float32)
    # Module init is alpha=ones, belt=zeros; perturb deterministically so the
    # variance path is actually exercised.
    alpha = 1.0 + s * jax.random.normal(ks[8], (1, C), jnp.float32)
    belt = s * jax.random.normal(ks[9], (1, C), jnp.float32)
    params = (w0, b0, wdw, bdw, w1, b1, w2, b2, alpha, belt)

    f = jax.random.normal(ks[10], (B, C, H, W), jnp.float32)
    ref = jax.block_until_ready(smfa_ref(f, params))

    # Strict structural check with f32 matmul operands.
    out_f32 = jax.block_until_ready(smfa_pallas(f, params, matmul_dtype=jnp.float32))
    assert out_f32.shape == (B, C, H, W)
    err_f32 = float(jnp.max(jnp.abs(out_f32 - ref)))
    assert err_f32 < 2e-3, f"f32-matmul max abs err {err_f32}"

    # Performance mode: bf16 MXU operands, f32 accumulation / elementwise /
    # variance.  Tolerance reflects bf16 operand rounding.
    out_bf16 = jax.block_until_ready(smfa_pallas(f, params, matmul_dtype=jnp.bfloat16))
    assert out_bf16.shape == (B, C, H, W)
    err_bf16 = float(jnp.max(jnp.abs(out_bf16 - ref)))
    assert err_bf16 < 3e-2, f"bf16-matmul max abs err {err_bf16}"

    print("KERNEL_OK")
</pallas_src>

<mosaic_0001>
module attributes {stable_mosaic.version = 11 : i64} {
  func.func @smfa_kernel(%arg0: i32, %arg1: memref<1x64x128xf32, #tpu.memory_space<vmem>>, %arg2: memref<128x128xf32, #tpu.memory_space<vmem>>, %arg3: memref<1x128xf32, #tpu.memory_space<vmem>>, %arg4: memref<128x128xf32, #tpu.memory_space<vmem>>, %arg5: memref<1x128xf32, #tpu.memory_space<vmem>>, %arg6: memref<9x128xf32, #tpu.memory_space<vmem>>, %arg7: memref<1x128xf32, #tpu.memory_space<vmem>>, %arg8: memref<128x128xf32, #tpu.memory_space<vmem>>, %arg9: memref<1x128xf32, #tpu.memory_space<vmem>>, %arg10: memref<128x128xf32, #tpu.memory_space<vmem>>, %arg11: memref<1x128xf32, #tpu.memory_space<vmem>>, %arg12: memref<1x128xf32, #tpu.memory_space<vmem>>, %arg13: memref<1x128xf32, #tpu.memory_space<vmem>>, %arg14: memref<1x64x128xf32, #tpu.memory_space<vmem>>) attributes {dimension_semantics = [#tpu.dimension_semantics<parallel>], iteration_bounds = array<i64: 2>, scalar_prefetch = 0 : i64, scratch_operands = 0 : i64, tpu.core_type = #tpu.core_type<tc>, window_params = [{transform_indices = @transform_0, window_bounds = array<i64: 1, 64, 128>}, {pipeline_mode = #tpu.pipeline_mode<synchronous>, transform_indices = @transform_1, window_bounds = array<i64: 128, 128>}, {pipeline_mode = #tpu.pipeline_mode<synchronous>, transform_indices = @transform_2, window_bounds = array<i64: 1, 128>}, {pipeline_mode = #tpu.pipeline_mode<synchronous>, transform_indices = @transform_3, window_bounds = array<i64: 128, 128>}, {pipeline_mode = #tpu.pipeline_mode<synchronous>, transform_indices = @transform_4, window_bounds = array<i64: 1, 128>}, {pipeline_mode = #tpu.pipeline_mode<synchronous>, transform_indices = @transform_5, window_bounds = array<i64: 9, 128>}, {pipeline_mode = #tpu.pipeline_mode<synchronous>, transform_indices = @transform_6, window_bounds = array<i64: 1, 128>}, {pipeline_mode = #tpu.pipeline_mode<synchronous>, transform_indices = @transform_7, window_bounds = array<i64: 128, 128>}, {pipeline_mode = #tpu.pipeline_mode<synchronous>, transform_indices = @transform_8, window_bounds = array<i64: 1, 128>}, {pipeline_mode = #tpu.pipeline_mode<synchronous>, transform_indices = @transform_9, window_bounds = array<i64: 128, 128>}, {pipeline_mode = #tpu.pipeline_mode<synchronous>, transform_indices = @transform_10, window_bounds = array<i64: 1, 128>}, {pipeline_mode = #tpu.pipeline_mode<synchronous>, transform_indices = @transform_11, window_bounds = array<i64: 1, 128>}, {pipeline_mode = #tpu.pipeline_mode<synchronous>, transform_indices = @transform_12, window_bounds = array<i64: 1, 128>}, {transform_indices = @transform_13, window_bounds = array<i64: 1, 64, 128>}]} {
    %c0 = arith.constant 0 : index
    %c0_0 = arith.constant 0 : index
    %c0_1 = arith.constant 0 : index
    %0 = vector.load %arg1[%c0, %c0_0, %c0_1] : memref<1x64x128xf32, #tpu.memory_space<vmem>>, vector<1x64x128xf32>
    %1 = vector.shape_cast %0 : vector<1x64x128xf32> to vector<64x128xf32>
    %c0_2 = arith.constant 0 : index
    %c0_3 = arith.constant 0 : index
    %2 = vector.load %arg2[%c0_2, %c0_3] : memref<128x128xf32, #tpu.memory_space<vmem>>, vector<128x128xf32>
    %cst = arith.constant dense<0.000000e+00> : vector<64x128xf32>
    %3 = tpu.matmul %1, %2, %cst {dimension_numbers = #tpu.dot_dimension_numbers<[1], [0], [0], [1], [0, 0, 1, 1], [], []>} : vector<64x128xf32>, vector<128x128xf32>, vector<64x128xf32> -> vector<64x128xf32>
    %c0_4 = arith.constant 0 : index
    %c0_5 = arith.constant 0 : index
    %4 = vector.load %arg3[%c0_4, %c0_5] : memref<1x128xf32, #tpu.memory_space<vmem>>, vector<1x128xf32>
    %5 = vector.broadcast %4 : vector<1x128xf32> to vector<64x128xf32>
    %6 = arith.addf %3, %5 : vector<64x128xf32>
    %c0_6 = arith.constant 0 : index
    %c0_7 = arith.constant 0 : index
    %7 = vector.load %arg4[%c0_6, %c0_7] : memref<128x128xf32, #tpu.memory_space<vmem>>, vector<128x128xf32>
    %cst_8 = arith.constant dense<0.000000e+00> : vector<64x128xf32>
    %8 = tpu.matmul %1, %7, %cst_8 {dimension_numbers = #tpu.dot_dimension_numbers<[1], [0], [0], [1], [0, 0, 1, 1], [], []>} : vector<64x128xf32>, vector<128x128xf32>, vector<64x128xf32> -> vector<64x128xf32>
    %c0_9 = arith.constant 0 : index
    %c0_10 = arith.constant 0 : index
    %9 = vector.load %arg5[%c0_9, %c0_10] : memref<1x128xf32, #tpu.memory_space<vmem>>, vector<1x128xf32>
    %10 = vector.broadcast %9 : vector<1x128xf32> to vector<64x128xf32>
    %11 = arith.addf %8, %10 : vector<64x128xf32>
    %12 = vector.shape_cast %11 : vector<64x128xf32> to vector<2x8x4x128xf32>
    %cst_11 = arith.constant dense<0xFF800000> : vector<2x4x128xf32>
    %13 = vector.multi_reduction <maximumf>, %12, %cst_11 [1] : vector<2x8x4x128xf32> to vector<2x4x128xf32>
    %14 = vector.shape_cast %13 : vector<2x4x128xf32> to vector<2x2x2x128xf32>
    %cst_12 = arith.constant dense<0xFF800000> : vector<2x2x128xf32>
    %15 = vector.multi_reduction <maximumf>, %14, %cst_12 [2] : vector<2x2x2x128xf32> to vector<2x2x128xf32>
    %16 = vector.shape_cast %15 : vector<2x2x128xf32> to vector<4x128xf32>
    %c32_i32 = arith.constant 32 : i32
    %17 = tpu.dynamic_rotate %16 by %c32_i32 dim 1 : vector<4x128xf32>, i32 -> vector<4x128xf32>
    %18 = arith.maximumf %16, %17 : vector<4x128xf32>
    %c64_i32 = arith.constant 64 : i32
    %19 = tpu.dynamic_rotate %18 by %c64_i32 dim 1 : vector<4x128xf32>, i32 -> vector<4x128xf32>
    %20 = arith.maximumf %18, %19 : vector<4x128xf32>
    %21 = vector.shape_cast %20 : vector<4x128xf32> to vector<2x2x128xf32>
    %cst_13 = arith.constant dense<0.000000e+00> : vector<128xf32>
    %22 = vector.multi_reduction <add>, %11, %cst_13 [0] : vector<64x128xf32> to vector<128xf32>
    %23 = vector.shape_cast %22 : vector<128xf32> to vector<1x128xf32>
    %c32_i32_14 = arith.constant 32 : i32
    %24 = tpu.dynamic_rotate %23 by %c32_i32_14 dim 1 : vector<1x128xf32>, i32 -> vector<1x128xf32>
    %25 = arith.addf %23, %24 : vector<1x128xf32>
    %c64_i32_15 = arith.constant 64 : i32
    %26 = tpu.dynamic_rotate %25 by %c64_i32_15 dim 1 : vector<1x128xf32>, i32 -> vector<1x128xf32>
    %27 = arith.addf %25, %26 : vector<1x128xf32>
    %cst_16 = arith.constant 3.906250e-03 : f32
    %28 = vector.broadcast %cst_16 : f32 to vector<1x128xf32>
    %29 = arith.mulf %27, %28 : vector<1x128xf32>
    %30 = vector.broadcast %29 : vector<1x128xf32> to vector<64x128xf32>
    %31 = arith.subf %11, %30 : vector<64x128xf32>
    %32 = arith.mulf %31, %31 : vector<64x128xf32>
    %cst_17 = arith.constant dense<0.000000e+00> : vector<128xf32>
    %33 = vector.multi_reduction <add>, %32, %cst_17 [0] : vector<64x128xf32> to vector<128xf32>
    %34 = vector.shape_cast %33 : vector<128xf32> to vector<1x128xf32>
    %c32_i32_18 = arith.constant 32 : i32
    %35 = tpu.dynamic_rotate %34 by %c32_i32_18 dim 1 : vector<1x128xf32>, i32 -> vector<1x128xf32>
    %36 = arith.addf %34, %35 : vector<1x128xf32>
    %c64_i32_19 = arith.constant 64 : i32
    %37 = tpu.dynamic_rotate %36 by %c64_i32_19 dim 1 : vector<1x128xf32>, i32 -> vector<1x128xf32>
    %38 = arith.addf %36, %37 : vector<1x128xf32>
    %cst_20 = arith.constant 0.00392156886 : f32
    %39 = vector.broadcast %cst_20 : f32 to vector<1x128xf32>
    %40 = arith.mulf %38, %39 : vector<1x128xf32>
    %cst_21 = arith.constant 0.000000e+00 : f32
    %41 = vector.broadcast %cst_21 : f32 to vector<2x1x128xf32>
    %cst_22 = arith.constant 0.000000e+00 : f32
    %42 = vector.broadcast %cst_22 : f32 to vector<1x4x128xf32>
    %43 = tpu.concatenate %41, %21, %41 in 1 : vector<2x1x128xf32>, vector<2x2x128xf32>, vector<2x1x128xf32> -> vector<2x4x128xf32>
    %44 = tpu.concatenate %42, %43, %42 in 0 : vector<1x4x128xf32>, vector<2x4x128xf32>, vector<1x4x128xf32> -> vector<4x4x128xf32>
    %c0_23 = arith.constant 0 : index
    %c0_24 = arith.constant 0 : index
    %45 = vector.load %arg6[%c0_23, %c0_24] : memref<9x128xf32, #tpu.memory_space<vmem>>, vector<9x128xf32>
    %cst_25 = arith.constant 0.000000e+00 : f32
    %46 = vector.broadcast %cst_25 : f32 to vector<2x2x128xf32>
    %c0_26 = arith.constant 0 : index
    %c0_27 = arith.constant 0 : index
    %47 = vector.load %arg7[%c0_26, %c0_27] : memref<1x128xf32, #tpu.memory_space<vmem>>, vector<1x128xf32>
    %48 = vector.shape_cast %47 : vector<1x128xf32> to vector<1x1x128xf32>
    %49 = vector.broadcast %48 : vector<1x1x128xf32> to vector<2x2x128xf32>
    %50 = arith.addf %46, %49 : vector<2x2x128xf32>
    %51 = vector.extract_strided_slice %44 {offsets = [0, 0, 0], sizes = [2, 2, 128], strides = [1, 1, 1]} : vector<4x4x128xf32> to vector<2x2x128xf32>
    %52 = vector.extract_strided_slice %45 {offsets = [0, 0], sizes = [1, 128], strides = [1, 1]} : vector<9x128xf32> to vector<1x128xf32>
    %53 = vector.shape_cast %52 : vector<1x128xf32> to vector<128xf32>
    %54 = vector.shape_cast %53 : vector<128xf32> to vector<1x1x128xf32>
    %55 = vector.broadcast %54 : vector<1x1x128xf32> to vector<2x2x128xf32>
    %56 = arith.mulf %51, %55 : vector<2x2x128xf32>
    %57 = arith.addf %50, %56 : vector<2x2x128xf32>
    %58 = vector.extract_strided_slice %44 {offsets = [0, 1, 0], sizes = [2, 2, 128], strides = [1, 1, 1]} : vector<4x4x128xf32> to vector<2x2x128xf32>
    %59 = vector.extract_strided_slice %45 {offsets = [1, 0], sizes = [1, 128], strides = [1, 1]} : vector<9x128xf32> to vector<1x128xf32>
    %60 = vector.shape_cast %59 : vector<1x128xf32> to vector<128xf32>
    %61 = vector.shape_cast %60 : vector<128xf32> to vector<1x1x128xf32>
    %62 = vector.broadcast %61 : vector<1x1x128xf32> to vector<2x2x128xf32>
    %63 = arith.mulf %58, %62 : vector<2x2x128xf32>
    %64 = arith.addf %57, %63 : vector<2x2x128xf32>
    %65 = vector.extract_strided_slice %44 {offsets = [0, 2, 0], sizes = [2, 2, 128], strides = [1, 1, 1]} : vector<4x4x128xf32> to vector<2x2x128xf32>
    %66 = vector.extract_strided_slice %45 {offsets = [2, 0], sizes = [1, 128], strides = [1, 1]} : vector<9x128xf32> to vector<1x128xf32>
    %67 = vector.shape_cast %66 : vector<1x128xf32> to vector<128xf32>
    %68 = vector.shape_cast %67 : vector<128xf32> to vector<1x1x128xf32>
    %69 = vector.broadcast %68 : vector<1x1x128xf32> to vector<2x2x128xf32>
    %70 = arith.mulf %65, %69 : vector<2x2x128xf32>
    %71 = arith.addf %64, %70 : vector<2x2x128xf32>
    %72 = vector.extract_strided_slice %44 {offsets = [1, 0, 0], sizes = [2, 2, 128], strides = [1, 1, 1]} : vector<4x4x128xf32> to vector<2x2x128xf32>
    %73 = vector.extract_strided_slice %45 {offsets = [3, 0], sizes = [1, 128], strides = [1, 1]} : vector<9x128xf32> to vector<1x128xf32>
    %74 = vector.shape_cast %73 : vector<1x128xf32> to vector<128xf32>
    %75 = vector.shape_cast %74 : vector<128xf32> to vector<1x1x128xf32>
    %76 = vector.broadcast %75 : vector<1x1x128xf32> to vector<2x2x128xf32>
    %77 = arith.mulf %72, %76 : vector<2x2x128xf32>
    %78 = arith.addf %71, %77 : vector<2x2x128xf32>
    %79 = vector.extract_strided_slice %44 {offsets = [1, 1, 0], sizes = [2, 2, 128], strides = [1, 1, 1]} : vector<4x4x128xf32> to vector<2x2x128xf32>
    %80 = vector.extract_strided_slice %45 {offsets = [4, 0], sizes = [1, 128], strides = [1, 1]} : vector<9x128xf32> to vector<1x128xf32>
    %81 = vector.shape_cast %80 : vector<1x128xf32> to vector<128xf32>
    %82 = vector.shape_cast %81 : vector<128xf32> to vector<1x1x128xf32>
    %83 = vector.broadcast %82 : vector<1x1x128xf32> to vector<2x2x128xf32>
    %84 = arith.mulf %79, %83 : vector<2x2x128xf32>
    %85 = arith.addf %78, %84 : vector<2x2x128xf32>
    %86 = vector.extract_strided_slice %44 {offsets = [1, 2, 0], sizes = [2, 2, 128], strides = [1, 1, 1]} : vector<4x4x128xf32> to vector<2x2x128xf32>
    %87 = vector.extract_strided_slice %45 {offsets = [5, 0], sizes = [1, 128], strides = [1, 1]} : vector<9x128xf32> to vector<1x128xf32>
    %88 = vector.shape_cast %87 : vector<1x128xf32> to vector<128xf32>
    %89 = vector.shape_cast %88 : vector<128xf32> to vector<1x1x128xf32>
    %90 = vector.broadcast %89 : vector<1x1x128xf32> to vector<2x2x128xf32>
    %91 = arith.mulf %86, %90 : vector<2x2x128xf32>
    %92 = arith.addf %85, %91 : vector<2x2x128xf32>
    %93 = vector.extract_strided_slice %44 {offsets = [2, 0, 0], sizes = [2, 2, 128], strides = [1, 1, 1]} : vector<4x4x128xf32> to vector<2x2x128xf32>
    %94 = vector.extract_strided_slice %45 {offsets = [6, 0], sizes = [1, 128], strides = [1, 1]} : vector<9x128xf32> to vector<1x128xf32>
    %95 = vector.shape_cast %94 : vector<1x128xf32> to vector<128xf32>
    %96 = vector.shape_cast %95 : vector<128xf32> to vector<1x1x128xf32>
    %97 = vector.broadcast %96 : vector<1x1x128xf32> to vector<2x2x128xf32>
    %98 = arith.mulf %93, %97 : vector<2x2x128xf32>
    %99 = arith.addf %92, %98 : vector<2x2x128xf32>
    %100 = vector.extract_strided_slice %44 {offsets = [2, 1, 0], sizes = [2, 2, 128], strides = [1, 1, 1]} : vector<4x4x128xf32> to vector<2x2x128xf32>
    %101 = vector.extract_strided_slice %45 {offsets = [7, 0], sizes = [1, 128], strides = [1, 1]} : vector<9x128xf32> to vector<1x128xf32>
    %102 = vector.shape_cast %101 : vector<1x128xf32> to vector<128xf32>
    %103 = vector.shape_cast %102 : vector<128xf32> to vector<1x1x128xf32>
    %104 = vector.broadcast %103 : vector<1x1x128xf32> to vector<2x2x128xf32>
    %105 = arith.mulf %100, %104 : vector<2x2x128xf32>
    %106 = arith.addf %99, %105 : vector<2x2x128xf32>
    %107 = vector.extract_strided_slice %44 {offsets = [2, 2, 0], sizes = [2, 2, 128], strides = [1, 1, 1]} : vector<4x4x128xf32> to vector<2x2x128xf32>
    %108 = vector.extract_strided_slice %45 {offsets = [8, 0], sizes = [1, 128], strides = [1, 1]} : vector<9x128xf32> to vector<1x128xf32>
    %109 = vector.shape_cast %108 : vector<1x128xf32> to vector<128xf32>
    %110 = vector.shape_cast %109 : vector<128xf32> to vector<1x1x128xf32>
    %111 = vector.broadcast %110 : vector<1x1x128xf32> to vector<2x2x128xf32>
    %112 = arith.mulf %107, %111 : vector<2x2x128xf32>
    %113 = arith.addf %106, %112 : vector<2x2x128xf32>
    %c0_28 = arith.constant 0 : index
    %c0_29 = arith.constant 0 : index
    %114 = vector.load %arg12[%c0_28, %c0_29] : memref<1x128xf32, #tpu.memory_space<vmem>>, vector<1x128xf32>
    %115 = vector.shape_cast %114 : vector<1x128xf32> to vector<1x1x128xf32>
    %116 = vector.broadcast %115 : vector<1x1x128xf32> to vector<2x2x128xf32>
    %117 = arith.mulf %113, %116 : vector<2x2x128xf32>
    %c0_30 = arith.constant 0 : index
    %c0_31 = arith.constant 0 : index
    %118 = vector.load %arg13[%c0_30, %c0_31] : memref<1x128xf32, #tpu.memory_space<vmem>>, vector<1x128xf32>
    %119 = arith.mulf %40, %118 : vector<1x128xf32>
    %120 = vector.shape_cast %119 : vector<1x128xf32> to vector<1x1x128xf32>
    %121 = vector.broadcast %120 : vector<1x1x128xf32> to vector<2x2x128xf32>
    %122 = arith.addf %117, %121 : vector<2x2x128xf32>
    %123 = vector.shape_cast %122 : vector<2x2x128xf32> to vector<4x128xf32>
    %c0_32 = arith.constant 0 : index
    %c0_33 = arith.constant 0 : index
    %124 = vector.load %arg8[%c0_32, %c0_33] : memref<128x128xf32, #tpu.memory_space<vmem>>, vector<128x128xf32>
    %cst_34 = arith.constant dense<0.000000e+00> : vector<4x128xf32>
    %125 = tpu.matmul %123, %124, %cst_34 {dimension_numbers = #tpu.dot_dimension_numbers<[1], [0], [0], [1], [0, 0, 1, 1], [], []>} : vector<4x128xf32>, vector<128x128xf32>, vector<4x128xf32> -> vector<4x128xf32>
    %c0_35 = arith.constant 0 : index
    %c0_36 = arith.constant 0 : index
    %126 = vector.load %arg9[%c0_35, %c0_36] : memref<1x128xf32, #tpu.memory_space<vmem>>, vector<1x128xf32>
    %127 = vector.broadcast %126 : vector<1x128xf32> to vector<4x128xf32>
    %128 = arith.addf %125, %127 : vector<4x128xf32>
    %cst_37 = arith.constant 5.000000e-01 : f32
    %129 = vector.broadcast %cst_37 : f32 to vector<4x128xf32>
    %130 = arith.mulf %129, %128 : vector<4x128xf32>
    %cst_38 = arith.constant 0.707106769 : f32
    %131 = vector.broadcast %cst_38 : f32 to vector<4x128xf32>
    %132 = arith.mulf %128, %131 : vector<4x128xf32>
    %133 = math.absf %132 : vector<4x128xf32>
    %cst_39 = arith.constant 0.327591091 : f32
    %134 = vector.broadcast %cst_39 : f32 to vector<4x128xf32>
    %135 = arith.mulf %134, %133 : vector<4x128xf32>
    %cst_40 = arith.constant 1.000000e+00 : f32
    %136 = vector.broadcast %cst_40 : f32 to vector<4x128xf32>
    %137 = arith.addf %136, %135 : vector<4x128xf32>
    %138 = tpu.reciprocal %137 {approx = true} : vector<4x128xf32> -> vector<4x128xf32>
    %cst_41 = arith.constant 1.06140542 : f32
    %139 = vector.broadcast %cst_41 : f32 to vector<4x128xf32>
    %140 = arith.mulf %139, %138 : vector<4x128xf32>
    %cst_42 = arith.constant -1.45315206 : f32
    %141 = vector.broadcast %cst_42 : f32 to vector<4x128xf32>
    %142 = arith.addf %140, %141 : vector<4x128xf32>
    %143 = arith.mulf %142, %138 : vector<4x128xf32>
    %cst_43 = arith.constant 1.42141378 : f32
    %144 = vector.broadcast %cst_43 : f32 to vector<4x128xf32>
    %145 = arith.addf %143, %144 : vector<4x128xf32>
    %146 = arith.mulf %145, %138 : vector<4x128xf32>
    %cst_44 = arith.constant -0.284496725 : f32
    %147 = vector.broadcast %cst_44 : f32 to vector<4x128xf32>
    %148 = arith.addf %146, %147 : vector<4x128xf32>
    %149 = arith.mulf %148, %138 : vector<4x128xf32>
    %cst_45 = arith.constant 0.254829586 : f32
    %150 = vector.broadcast %cst_45 : f32 to vector<4x128xf32>
    %151 = arith.addf %149, %150 : vector<4x128xf32>
    %152 = arith.mulf %151, %138 : vector<4x128xf32>
    %cst_46 = arith.constant 0.000000e+00 : f32
    %153 = vector.broadcast %cst_46 : f32 to vector<4x128xf32>
    %154 = arith.subf %153, %133 : vector<4x128xf32>
    %155 = arith.mulf %154, %133 : vector<4x128xf32>
    %156 = math.exp %155 : vector<4x128xf32>
    %157 = arith.mulf %152, %156 : vector<4x128xf32>
    %cst_47 = arith.constant 1.000000e+00 : f32
    %158 = vector.broadcast %cst_47 : f32 to vector<4x128xf32>
    %159 = arith.subf %158, %157 : vector<4x128xf32>
    %cst_48 = arith.constant 0.000000e+00 : f32
    %160 = vector.broadcast %cst_48 : f32 to vector<4x128xf32>
    %161 = arith.cmpf oge, %132, %160 : vector<4x128xf32>
    %cst_49 = arith.constant 0.000000e+00 : f32
    %162 = vector.broadcast %cst_49 : f32 to vector<4x128xf32>
    %163 = arith.subf %162, %159 : vector<4x128xf32>
    %164 = arith.select %161, %159, %163 : vector<4x128xi1>, vector<4x128xf32>
    %cst_50 = arith.constant 1.000000e+00 : f32
    %165 = vector.broadcast %cst_50 : f32 to vector<4x128xf32>
    %166 = arith.addf %165, %164 : vector<4x128xf32>
    %167 = arith.mulf %130, %166 : vector<4x128xf32>
    %168 = vector.shape_cast %167 : vector<4x128xf32> to vector<2x1x2x1x128xf32>
    %169 = vector.shape_cast %168 : vector<2x1x2x1x128xf32> to vector<2x1x2x1x128xf32>
    %170 = vector.broadcast %169 : vector<2x1x2x1x128xf32> to vector<2x8x2x2x128xf32>
    %171 = vector.shape_cast %170 : vector<2x8x2x2x128xf32> to vector<64x128xf32>
    %172 = arith.mulf %11, %171 : vector<64x128xf32>
    %173 = arith.addf %6, %172 : vector<64x128xf32>
    %c0_51 = arith.constant 0 : index
    %c0_52 = arith.constant 0 : index
    %174 = vector.load %arg10[%c0_51, %c0_52] : memref<128x128xf32, #tpu.memory_space<vmem>>, vector<128x128xf32>
    %cst_53 = arith.constant dense<0.000000e+00> : vector<64x128xf32>
    %175 = tpu.matmul %173, %174, %cst_53 {dimension_numbers = #tpu.dot_dimension_numbers<[1], [0], [0], [1], [0, 0, 1, 1], [], []>} : vector<64x128xf32>, vector<128x128xf32>, vector<64x128xf32> -> vector<64x128xf32>
    %c0_54 = arith.constant 0 : index
    %c0_55 = arith.constant 0 : index
    %176 = vector.load %arg11[%c0_54, %c0_55] : memref<1x128xf32, #tpu.memory_space<vmem>>, vector<1x128xf32>
    %177 = vector.broadcast %176 : vector<1x128xf32> to vector<64x128xf32>
    %178 = arith.addf %175, %177 : vector<64x128xf32>
    %c0_56 = arith.constant 0 : index
    %c0_57 = arith.constant 0 : index
    %c0_58 = arith.constant 0 : index
    %179 = vector.load %arg14[%c0_56, %c0_57, %c0_58] : memref<1x64x128xf32, #tpu.memory_space<vmem>>, vector<1x64x128xf32>
    %180 = vector.shape_cast %179 : vector<1x64x128xf32> to vector<64x128xf32>
    %181 = vector.shape_cast %178 : vector<64x128xf32> to vector<1x64x128xf32>
    tpu.vector_store %arg14[%c0_56, %c0_57, %c0_58], %181 {strides = array<i32>} : memref<1x64x128xf32, #tpu.memory_space<vmem>>, vector<1x64x128xf32>,
    return
  }
  func.func @transform_0(%arg0: i32) -> (i32, i32, i32) {
    %c0_i32 = arith.constant 0 : i32
    %c0_i32_0 = arith.constant 0 : i32
    %c0_i32_1 = arith.constant 0 : i32
    return %arg0, %c0_i32, %c0_i32_0 : i32, i32, i32
  }
  func.func @transform_1(%arg0: i32) -> (i32, i32) {
    %c0_i32 = arith.constant 0 : i32
    %c0_i32_0 = arith.constant 0 : i32
    %c0_i32_1 = arith.constant 0 : i32
    return %c0_i32, %c0_i32_0 : i32, i32
  }
  func.func @transform_2(%arg0: i32) -> (i32, i32) {
    %c0_i32 = arith.constant 0 : i32
    %c0_i32_0 = arith.constant 0 : i32
    %c0_i32_1 = arith.constant 0 : i32
    return %c0_i32, %c0_i32_0 : i32, i32
  }
  func.func @transform_3(%arg0: i32) -> (i32, i32) {
    %c0_i32 = arith.constant 0 : i32
    %c0_i32_0 = arith.constant 0 : i32
    %c0_i32_1 = arith.constant 0 : i32
    return %c0_i32, %c0_i32_0 : i32, i32
  }
  func.func @transform_4(%arg0: i32) -> (i32, i32) {
    %c0_i32 = arith.constant 0 : i32
    %c0_i32_0 = arith.constant 0 : i32
    %c0_i32_1 = arith.constant 0 : i32
    return %c0_i32, %c0_i32_0 : i32, i32
  }
  func.func @transform_5(%arg0: i32) -> (i32, i32) {
    %c0_i32 = arith.constant 0 : i32
    %c0_i32_0 = arith.constant 0 : i32
    %c0_i32_1 = arith.constant 0 : i32
    return %c0_i32, %c0_i32_0 : i32, i32
  }
  func.func @transform_6(%arg0: i32) -> (i32, i32) {
    %c0_i32 = arith.constant 0 : i32
    %c0_i32_0 = arith.constant 0 : i32
    %c0_i32_1 = arith.constant 0 : i32
    return %c0_i32, %c0_i32_0 : i32, i32
  }
  func.func @transform_7(%arg0: i32) -> (i32, i32) {
    %c0_i32 = arith.constant 0 : i32
    %c0_i32_0 = arith.constant 0 : i32
    %c0_i32_1 = arith.constant 0 : i32
    return %c0_i32, %c0_i32_0 : i32, i32
  }
  func.func @transform_8(%arg0: i32) -> (i32, i32) {
    %c0_i32 = arith.constant 0 : i32
    %c0_i32_0 = arith.constant 0 : i32
    %c0_i32_1 = arith.constant 0 : i32
    return %c0_i32, %c0_i32_0 : i32, i32
  }
  func.func @transform_9(%arg0: i32) -> (i32, i32) {
    %c0_i32 = arith.constant 0 : i32
    %c0_i32_0 = arith.constant 0 : i32
    %c0_i32_1 = arith.constant 0 : i32
    return %c0_i32, %c0_i32_0 : i32, i32
  }
  func.func @transform_10(%arg0: i32) -> (i32, i32) {
    %c0_i32 = arith.constant 0 : i32
    %c0_i32_0 = arith.constant 0 : i32
    %c0_i32_1 = arith.constant 0 : i32
    return %c0_i32, %c0_i32_0 : i32, i32
  }
  func.func @transform_11(%arg0: i32) -> (i32, i32) {
    %c0_i32 = arith.constant 0 : i32
    %c0_i32_0 = arith.constant 0 : i32
    %c0_i32_1 = arith.constant 0 : i32
    return %c0_i32, %c0_i32_0 : i32, i32
  }
  func.func @transform_12(%arg0: i32) -> (i32, i32) {
    %c0_i32 = arith.constant 0 : i32
    %c0_i32_0 = arith.constant 0 : i32
    %c0_i32_1 = arith.constant 0 : i32
    return %c0_i32, %c0_i32_0 : i32, i32
  }
  func.func @transform_13(%arg0: i32) -> (i32, i32, i32) {
    %c0_i32 = arith.constant 0 : i32
    %c0_i32_0 = arith.constant 0 : i32
    %c0_i32_1 = arith.constant 0 : i32
    return %arg0, %c0_i32, %c0_i32_0 : i32, i32, i32
  }
}

</mosaic_0001>

<bundles_post_ra>
// kernel: tpu_custom_call.1
= control target key start
LH: loop header
LB: loop body
LE: loop exit
PB: predicated region body
PF: predicated region fallthrough
CT: control target
= control target key end

     0   :  { %s2229_s0 = inlined_call_operand.hbm [shape: f32[2,64,128], index: 0, kind: input, shape index: {}]   ;;  %s2230_s1 = inlined_call_operand.hbm [shape: f32[128,128], index: 1, kind: input, shape index: {}]   ;;  %s2231_s2 = inlined_call_operand.vmem [shape: f32[1,128], index: 2, kind: input, shape index: {}]   ;;  %s2232_s3 = inlined_call_operand.hbm [shape: f32[128,128], index: 3, kind: input, shape index: {}]   ;;  %s2233_s4 = inlined_call_operand.vmem [shape: f32[1,128], index: 4, kind: input, shape index: {}]   ;;  %s2234_s5 = inlined_call_operand.hbm [shape: f32[9,128], index: 5, kind: input, shape index: {}]   ;;  %s2235_s6 = inlined_call_operand.vmem [shape: f32[1,128], index: 6, kind: input, shape index: {}]   ;;  %s2236_s7 = inlined_call_operand.hbm [shape: f32[128,128], index: 7, kind: input, shape index: {}]   ;;  %s2237_s8 = inlined_call_operand.vmem [shape: f32[1,128], index: 8, kind: input, shape index: {}]   ;;  %s2238_s9 = inlined_call_operand.hbm [shape: f32[128,128], index: 9, kind: input, shape index: {}]   ;;  %s2239_s10 = inlined_call_operand.vmem [shape: f32[1,128], index: 10, kind: input, shape index: {}]   ;;  %s2240_s11 = inlined_call_operand.vmem [shape: f32[1,128], index: 11, kind: input, shape index: {}]   ;;  %s2241_s12 = inlined_call_operand.vmem [shape: f32[1,128], index: 12, kind: input, shape index: {}]   ;;  %s2242_s13 = inlined_call_operand.hbm [shape: f32[2,64,128], index: 13, kind: output, shape index: {}]  }
   0x1   :  { %2246 = sst [smem:[#allocation20_spill]] %s2230_s1 }
   0x2   :  { %2247 = sst [smem:[#allocation21_spill]] %s2232_s3 }
   0x3   :  { %2248 = sst [smem:[#allocation22_spill]] %s2234_s5 }
   0x4   :  { %2249 = sst [smem:[#allocation23_spill]] %s2236_s7 }
   0x5   :  { %2250 = sst [smem:[#allocation24_spill]] %s2238_s9 }
   0x6   :  { %2251 = sst [smem:[#allocation25_spill]] %s2242_s13 }
   0x7   :  { %18 = vsyncpa [#allocation3], 0 }
   0x8   :  { %20 = vsyncpa [#allocation3 + $0x1], 0 }
   0x9   :  { %21 = vsyncpa [#allocation6], 0 }
   0xa   :  { %22 = vsyncpa [#allocation9], 0 }
   0xb   :  { %23 = vsyncpa [#allocation12], 0 }
   0xc   :  { %24 = vsyncpa [#allocation4], 0 }
   0xd   :  { %26 = vsyncpa [#allocation4 + $0x1], 0  ;;  %s1836_s25 = smov 0   ;;  %s1838_s26 = smov 0  }
   0xe   :  { %s1840_s27 = smov 0   ;;  %s1842_s28 = smov 0  }
   0xf LB: > { %s2252_s1 = sld [smem:[#allocation20_spill]]  ;;  %s1860_s15 = sadd.s32 4294967295, %s1753_s28   ;;  %s1753_s28 = sphi %s1842_s28, %s2272_s28   ;;  %s1749_s27 = sphi %s1840_s27, %s2271_s27   ;;  %s1745_s26 = sphi %s1838_s26, %s2270_s26   ;;  %s1741_s25 = sphi %s1836_s25, %s2269_s25  }
  0x10   : > { %p1356_p0 = scmp.ge.s32.totalorder %s1753_s28, 1  ;;  %p53_p1 = scmp.eq.s32.totalorder %s1860_s15, 0 }
  0x11   : > { %p341_p2 = scmp.lt.s32.totalorder %s1753_s28, 3  ;;  %s1755_s17 = smov [#allocation5]  }
  0x12   : > { %s354_s18 = sshll.u32 %s1755_s17, 4  ;;  %s2254_s5 = sld [smem:[#allocation22_spill]]  ;;  %s355_s18 = int_to_ptr.vmem [resolvable:$true] %s354_s18 }
  0x13   : > { %p1865_p3 = pnand %p1356_p0, %p341_p2  ;;  %s2256_s3 = sld [smem:[#allocation21_spill]] }
  0x14   : > { %s1756_s30 = smov [#allocation8]   ;;  %s2245_s13 = smov 8  }
  0x15   : > { %s352_s14 = sshll.u32 %s2252_s1, 4  ;;  %p1405_p4 = pneg %p1865_p3  ;;  %s353_s14 = int_to_ptr.hbm [resolvable:$true] %s352_s14 }
  0x16   : > { %s388_s17 = sshll.u32 %s1756_s30, 4  ;;  %s2244_s1 = smov 128   ;;  %s389_s17 = int_to_ptr.vmem [resolvable:$true] %s388_s17 }
  0x17   : > { %p1877_p6 = pnand %p1405_p4, %p53_p1  ;;  %s2257_s7 = sld [smem:[#allocation23_spill]] }
  0x18   : > { %s386_s21 = sshll.u32 %s2254_s5, 4  ;;  %s1759_s24 = smov [#allocation7]   ;;  %s387_s21 = int_to_ptr.hbm [resolvable:$true] %s386_s21 }
  0x19   : > { %s369_s29 = sshll.u32 %s2256_s3, 4  ;;  %s371_s30 = sshll.u32 %s1759_s24, 4  ;;  %s370_s29 = int_to_ptr.hbm [resolvable:$true] %s369_s29  ;;  %s372_s30 = int_to_ptr.vmem [resolvable:$true] %s371_s30 }
  0x1a   : > { %1408 = dma.hbm_to_vmem [thread:$0]  (!%p1877_p6), %s353_s14, 2048, %s355_s18, [#allocation6], %s2244_s1, %s2244_s1, %s2245_s13  }
  0x1b   : > { %1414 = dma.hbm_to_vmem [thread:$0]  (!%p1877_p6), %s387_s21, 256, %s389_s17, [#allocation9], %s2244_s1, %s2244_s1, %s2245_s13  }
  0x1c   : > { %1411 = dma.hbm_to_vmem [thread:$0]  (!%p1877_p6), %s370_s29, 2048, %s372_s30, [#allocation6], %s2244_s1, %s2244_s1, %s2245_s13  }
  0x1d   : > { %s403_s23 = sshll.u32 %s2257_s7, 4  ;;  %s1760_s14 = smov [#allocation10]   ;;  %s404_s23 = int_to_ptr.hbm [resolvable:$true] %s403_s23 }
  0x1e   : > { %s405_s18 = sshll.u32 %s1760_s14, 4  ;;  %s2258_s9 = sld [smem:[#allocation24_spill]]  ;;  %s406_s18 = int_to_ptr.vmem [resolvable:$true] %s405_s18 }
  0x1f   : > { %1417 = dma.hbm_to_vmem [thread:$0]  (!%p1877_p6), %s404_s23, 2048, %s406_s18, [#allocation9], %s2244_s1, %s2244_s1, %s2245_s13  }
  0x20   : > { %s1761_s29 = smov [#allocation11]   ;;  %s1355_s24 = sadd.s32 4294967294, %s1753_s28  }
  0x21   : > { %s422_s20 = sshll.u32 %s1761_s29, 4  ;;  %s1917_s30 = sadd.s32 1, %s1753_s28   ;;  %s423_s20 = int_to_ptr.vmem [resolvable:$true] %s422_s20 }
  0x22   : > { %s39_s14 = sadd.s32 1, %s1749_s27  ;;  %s36_s21 = ssub.s32 %s1753_s28, %s1917_s30 }
  0x23   : > { %p46_p7 = scmp.ne.s32.totalorder %s1749_s27, %s1745_s26  ;;  %p37_p8 = scmp.eq.s32.totalorder %s36_s21, 0 }
  0x24   : > { %s420_s19 = sshll.u32 %s2258_s9, 4  ;;  %p47_p9 = scmp.eq.s32.totalorder %s1753_s28, 0  ;;  %s421_s19 = int_to_ptr.hbm [resolvable:$true] %s420_s19 }
  0x25   : > { %1420 = dma.hbm_to_vmem [thread:$0]  (!%p1877_p6), %s421_s19, 2048, %s423_s20, [#allocation12], %s2244_s1, %s2244_s1, %s2245_s13  }
  0x26   : > { %p52_p10 = scmp.ne.s32.totalorder %s1745_s26, %s1741_s25  ;;  %p328_p11 = scmp.eq.s32.totalorder %s1860_s15, 1 }
  0x27   : > { %s1929_s23 = scalar_select %p37_p8, %s1749_s27, %s39_s14  }
  0x28   : > { %p1933_p12 = por %p53_p1, %p52_p10  ;;  %p1937_p13 = por %p328_p11, %p46_p7 }
  0x29   : > { %2259 = sst [smem:[#allocation19_spill]] %s1929_s23  ;;  %p334_p0 = scmp.eq.s32.totalorder %s1355_s24, 1 }
  0x2a   : > { %p48_p2 = por %p47_p9, %p46_p7  ;;  %s445_s17 = sand.u32 1, %s1749_s27  }
  0x2b   : > { %p1942_p4 = por %p334_p0, %p52_p10  ;;  %p1434_p6 = scmp.lt.s32.totalorder %s1753_s28, 2 }
  0x2c   : > { %s1363_s29 = sshll.u32 %s445_s17, 6  ;;  %s1379_s20 = sshll.u32 %s1753_s28, 6 }
  0x2d   : > { %s454_s1 = scalar_lea.hbm %s2229_s0, %s1379_s20  ;;  %s449_s3 = scalar_lea.vmem [#allocation2], %s1363_s29 }
  0x2e   : > { %s455_s13 = sshll.u32 %s454_s1, 4  ;;  %s457_s5 = sshll.u32 %s449_s3, 4  ;;  %s456_s13 = int_to_ptr.hbm [resolvable:$true] %s455_s13  ;;  %s458_s5 = int_to_ptr.vmem [resolvable:$true] %s457_s5 }
  0x2f   : > { %p1951_p8 = pnand %p1434_p6, %p48_p2  ;;  %s446_s7 = scalar_lea.sflag [#allocation3], %s445_s17 }
  0x30   : > { %s1645_s9 = sshra.s32 %s456_s13, 4  ;;  %s1652_s3 = scalar_lea.hbm %s2229_s0, 128  ;;  %s1646_s9 = int_to_ptr.hbm [resolvable:$true] %s1645_s9 }
  0x31   : > { %s1647_s23 = scalar_lea.hbm %s1646_s9, 64  ;;  %p1649_p9 = pneg %p1951_p8 }
  0x32   : > { %p1648_p7 = scmp.ne.s32.totalorder %s1646_s9, %s1647_s23  ;;  %p1653_p0 = scmp.lt.s32.totalorder %s1646_s9, %s2229_s0 }
  0x33   : > { %p1654_p2 = scmp.lt.s32.totalorder %s1652_s3, %s1647_s23 }
  0x34   : > { %p1650_p10 = pnand %p1649_p9, %p1648_p7 }
  0x35   : > { %p1655_p6 = por %p1654_p2, %p1653_p0 }
  0x36   : > { %p1651_p11 = pneg %p1650_p10 }
  0x38   : > { %p1656_p5 = pnand %p1655_p6, %p1651_p11 }
  0x3a   : > { %1659 = shalt.err (!%p1656_p5)
}
  0x3b   : > { %s2264_s17 = smov 8   ;;  %s2265_s21 = smov 128  }
  0x3c   : > { %1424 = dma.hbm_to_vmem [thread:$0]  (!%p1951_p8), %s456_s13, 1024, %s458_s5, %s446_s7, %s2265_s21, %s2265_s21, %s2264_s17  }
  0x3d   : > { %469 = sbr.rel (%p1865_p3) target bundleno = 1187 (0x4a3), region = 72  ;;  %s1971_s20 = sand.u32 (!%p1865_p3), 1, %s1745_s26  }
  0x3e   : > { %s1367_s9 = sshll.u32 (!%p1865_p3), %s1971_s20, 6  ;;  %s472_s23 = scalar_lea.sflag (!%p1865_p3), [#allocation3], %s1971_s20 }
  0x3f   : > { %s1977_s1 = scalar_lea.vmem (!%p1865_p3), [#allocation2], %s1367_s9 }
  0x42   : > { %1720 = dma.done.wait (%p1933_p12), %s472_s23, 1024  }
  0x43   : > { %1722 = vsyncadd (%p1933_p12), %s472_s23, 4294966272 }
  0x44   : > { %1724 = dma.done.wait (%p53_p1), [#allocation6], 4096  }
  0x45   : > { %1726 = vsyncadd (%p53_p1), [#allocation6], 4294963200 }
  0x46   : > { %1728 = dma.done.wait (%p53_p1), [#allocation9], 2304  }
  0x47   : > { %1730 = vsyncadd (%p53_p1), [#allocation9], 4294964992 }
  0x48   : > { %1732 = dma.done.wait (%p53_p1), [#allocation12], 2048  }
  0x49   : > { %1734 = vsyncadd (%p53_p1), [#allocation12], 4294965248  ;;  %v628_v0 = vld [vmem:[#allocation7 + $0x78] sm:$0xff]  ;;  %v627_v1 = vld [vmem:[#allocation7 + $0x70] sm:$0xff]  ;;  %vm698_vm0 = vcmask 1043456   ;;  %vm735_vm1 = vcmask 1043458  }
  0x4a   : > { %633 = vmatpush.msra.mxu1 %v628_v0  ;;  %v626_v2 = vld [vmem:[#allocation7 + $0x68] sm:$0xff]  ;;  %v625_v3 = vld [vmem:[#allocation7 + $0x60] sm:$0xff]  ;;  %v624_v4 = vld [vmem:[#allocation7 + $0x58] sm:$0xff]  ;;  %vm733_vm2 = vcmask 1041408   ;;  %s1762_s13 = smov 32   ;;  %vm777_vm3 = vcmask 1041409  }
  0x4b   : > { %v623_v5 = vld [vmem:[#allocation7 + $0x50] sm:$0xff]  ;;  %v622_v6 = vld [vmem:[#allocation7 + $0x48] sm:$0xff]  ;;  %v621_v7 = vld [vmem:[#allocation7 + $0x40] sm:$0xff]  ;;  %vm779_vm4 = vcmask 1042434   ;;  %vm781_vm5 = vcmask 1043459   ;;  %s1763_s16 = smov 64  }
  0x4c   : > { %634 = vmatpush.msra.mxu1 %v627_v1  ;;  %v620_v8 = vld [vmem:[#allocation7 + $0x38] sm:$0xff]  ;;  %v619_v9 = vld [vmem:[#allocation7 + $0x30] sm:$0xff]  ;;  %v618_v10 = vld [vmem:[#allocation7 + $0x28] sm:$0xff]  ;;  %vm892_vm6 = vcmask 1040384   ;;  %vm895_vm7 = vcmask 1042432   ;;  %s2266_s3 = sld [smem:[#allocation25_spill]] }
  0x4d   : > { %v617_v11 = vld [vmem:[#allocation7 + $0x20] sm:$0xff]  ;;  %v616_v12 = vld [vmem:[#allocation7 + $0x18] sm:$0xff]  ;;  %v615_v13 = vld [vmem:[#allocation7 + $0x10] sm:$0xff]  ;;  %s1219_s21 = scalar_lea.sflag [#allocation4], %s1971_s20 }
  0x4e   : > { %635 = vmatpush.msra.mxu1 %v626_v2  ;;  %v614_v14 = vld [vmem:[#allocation7 + $0x8] sm:$0xff]  ;;  %v613_v15 = vld [vmem:[#allocation7] sm:$0xff]  ;;  %v2004_v18 = vld [vmem:[%s1977_s1 + $0x10] sm:$0xff] }
  0x4f   : > { %v1996_v16 = vld [vmem:[%s1977_s1] sm:$0xff]  ;;  %v2000_v17 = vld [vmem:[%s1977_s1 + $0x8] sm:$0xff]  ;;  %v2008_v19 = vld [vmem:[%s1977_s1 + $0x18] sm:$0xff] }
  0x50   : > { %636 = vmatpush.msra.mxu1 %v625_v3  ;;  %v2012_v20 = vld [vmem:[%s1977_s1 + $0x20] sm:$0xff]  ;;  %v2016_v21 = vld [vmem:[%s1977_s1 + $0x28] sm:$0xff]  ;;  %v2020_v22 = vld [vmem:[%s1977_s1 + $0x30] sm:$0xff] }
  0x51   : > { %v2024_v23 = vld [vmem:[%s1977_s1 + $0x38] sm:$0xff] }
  0x52   : > { %637 = vmatpush.msra.mxu1 %v624_v4  ;;  %v1484_v27 = vld [vmem:[%s2233_s4] ss:$0 sm:$0xff]  ;;  %s1695_s7 = scalar_lea.hbm %s2266_s3, 128 }
  0x54   : > { %638 = vmatpush.msra.mxu1 %v623_v5 }
  0x56   : > { %639 = vmatpush.msra.mxu1 %v622_v6 }
  0x58   : > { %640 = vmatpush.msra.mxu1 %v621_v7 }
  0x5a   : > { %641 = vmatpush.msra.mxu1 %v620_v8 }
  0x5c   : > { %642 = vmatpush.msra.mxu1 %v619_v9 }
  0x5e   : > { %643 = vmatpush.msra.mxu1 %v618_v10 }
  0x60   : > { %644 = vmatpush.msra.mxu1 %v617_v11 }
  0x62   : > { %645 = vmatpush.msra.mxu1 %v616_v12 }
  0x64   : > { %646 = vmatpush.msra.mxu1 %v615_v13 }
  0x66   : > { %647 = vmatpush.msra.mxu1 %v614_v14 }
  0x68   : > { %648 = vmatpush.msra.mxu1 %v613_v15 }
  0x69   : > { %649 = vmatmul.f32.vlgmr.msra.gmra.mxu1 %v1996_v16 }
  0x71   : > { %652 = vmatmul.f32.gmra.mxu1 %v2000_v17 }
  0x79   : > { %655 = vmatmul.f32.gmra.mxu1 %v2004_v18 }
  0x81   : > { %658 = vmatmul.f32.gmra.mxu1 %v2008_v19 }
  0x89   : > { %661 = vmatmul.f32.gmra.mxu1 %v2012_v20 }
  0x91   : > { %664 = vmatmul.f32.gmra.mxu1 %v2016_v21 }
  0x99   : > { %667 = vmatmul.f32.gmra.mxu1 %v2020_v22 }
  0xa1   : > { %670 = vmatmul.f32.gmra.mxu1 %v2024_v23 }
  0xe6   : > { %v650_v24 = vpop.f32.mrf.mxu1 }
  0xe7   : > { %v2032_v29 = vadd.f32 %v1484_v27, %v650_v24 }
  0xe9   : > { %v682_v33 = vrot.slane %v2032_v29, 4  ;;  %v699_v42 = vsel %vm698_vm0, %v2032_v29, -inf }
  0xeb   : > { %v700_v38 = vsel %vm698_vm0, %v682_v33, -inf }
  0xee   : > { %v653_v25 = vpop.f32.mrf.mxu1 }
  0xef   : > { %v2030_v28 = vadd.f32 %v1484_v27, %v653_v25 }
  0xf1   : > { %v683_v31 = vrot.slane %v2030_v28, 4  ;;  %v701_v39 = vsel %vm698_vm0, %v2030_v28, -inf  ;;  %v823_v56 = vadd.f32 %v2030_v28, %v2032_v29 }
  0xf2   : > { %v702_v45 = vmax.f32 %v699_v42, %v701_v39 }
  0xf3   : > { %v703_v36 = vsel %vm698_vm0, %v683_v31, -inf }
  0xf4   : > { %v704_v41 = vmax.f32 %v700_v38, %v703_v36 }
  0xf6   : > { %v656_v26 = vpop.f32.mrf.mxu1 }
  0xf7   : > { %v2034_v30 = vadd.f32 %v1484_v27, %v656_v26 }
  0xf9   : > { %v684_v34 = vrot.slane %v2034_v30, 4  ;;  %v705_v43 = vsel %vm698_vm0, %v2034_v30, -inf  ;;  %v824_v60 = vadd.f32 %v823_v56, %v2034_v30 }
  0xfa   : > { %v706_v49 = vmax.f32 %v702_v45, %v705_v43 }
  0xfb   : > { %v707_v40 = vsel %vm698_vm0, %v684_v34, -inf }
  0xfc   : > { %v708_v46 = vmax.f32 %v704_v41, %v707_v40 }
  0xfe   : > { %v659_v32 = vpop.f32.mrf.mxu1 }
  0xff   : > { %v2039_v35 = vadd.f32 %v1484_v27, %v659_v32 }
 0x101   : > { %v685_v37 = vrot.slane %v2039_v35, 4  ;;  %v709_v48 = vsel %vm698_vm0, %v2039_v35, -inf  ;;  %v825_v63 = vadd.f32 %v824_v60, %v2039_v35 }
 0x102   : > { %v710_v51 = vmax.f32 %v706_v49, %v709_v48 }
 0x103   : > { %v711_v44 = vsel %vm698_vm0, %v685_v37, -inf }
 0x104   : > { %v712_v50 = vmax.f32 %v708_v46, %v711_v44 }
 0x106   : > { %v662_v47 = vpop.f32.mrf.mxu1  ;;  %v713_v52 = vmax.f32 %v710_v51, %v712_v50 }
 0x107   : > { %v2059_v58 = vadd.f32 %v1484_v27, %v662_v47 }
 0x108   : > { %v731_v54 = vrot.slane %v713_v52, 2 }
 0x109   : > { %v686_v1 = vrot.slane %v2059_v58, 4  ;;  %v826_v2 = vadd.f32 %v825_v63, %v2059_v58  ;;  %v714_v9 = vsel %vm698_vm0, %v2059_v58, -inf }
 0x10a   : > { %v736_v55 = vsel %vm735_vm1, %v713_v52, %v731_v54  ;;  %v734_v4 = vsel %vm733_vm2, %v713_v52, %v731_v54 }
 0x10b   : > { %v737_v62 = vrot.slane %v736_v55, 2  ;;  %v715_v10 = vsel %vm698_vm0, %v686_v1, -inf  ;;  %v745_v12 = vsel %vm733_vm2, %v734_v4, -inf }
 0x10c   : > { %v746_v36 = vrot.slane %v745_v12, 4 }
 0x10d   : > { %v752_v5 = vsel %vm733_vm2, %v737_v62, -inf }
 0x10e   : > { %v665_v53 = vpop.f32.mrf.mxu1  ;;  %v753_v13 = vrot.slane %v752_v5, 4  ;;  %v747_v44 = vmax.f32 %v745_v12, %v746_v36 }
 0x10f   : > { %v2057_v57 = vadd.f32 %v1484_v27, %v665_v53 }
 0x110   : > { %v754_v41 = vmax.f32 %v752_v5, %v753_v13  ;;  %v748_v50 = vrot.slane %v747_v44, 2 }
 0x111   : > { %v687_v0 = vrot.slane %v2057_v57, 4  ;;  %v716_v6 = vsel %vm698_vm0, %v2057_v57, -inf  ;;  %v827_v8 = vadd.f32 %v826_v2, %v2057_v57 }
 0x112   : > { %v717_v26 = vmax.f32 %v714_v9, %v716_v6  ;;  %v755_v47 = vrot.slane %v754_v41, 2  ;;  %v749_v62 = vmax.f32 %v747_v44, %v748_v50 }
 0x113   : > { %v718_v7 = vsel %vm698_vm0, %v687_v0, -inf }
 0x114   : > { %v719_v31 = vmax.f32 %v715_v10, %v718_v7  ;;  %v756_v55 = vmax.f32 %v754_v41, %v755_v47  ;;  %v750_v5 = vrot.slane %v749_v62, 1 }
 0x116   : > { %v668_v59 = vpop.f32.mrf.mxu1  ;;  %v757_v2 = vrot.slane %v756_v55, 1 }
 0x117   : > { %v2062_v61 = vadd.f32 %v1484_v27, %v668_v59 }
 0x119   : > { %v688_v3 = vrot.slane %v2062_v61, 4  ;;  %v720_v14 = vsel %vm698_vm0, %v2062_v61, -inf  ;;  %v828_v25 = vadd.f32 %v827_v8, %v2062_v61  ;;  %v758_v8 = vmax.f32 %v756_v55, %v757_v2 }
 0x11a   : > { %v721_v37 = vmax.f32 %v717_v26, %v720_v14 }
 0x11b   : > { %v722_v15 = vsel %vm698_vm0, %v688_v3, -inf }
 0x11c   : > { %v723_v38 = vmax.f32 %v719_v31, %v722_v15 }
 0x11e   : > { %v671_v11 = vpop.f32.mrf.mxu1 }
 0x11f   : > { %v2082_v24 = vadd.f32 %v1484_v27, %v671_v11  ;;  %v751_v11 = vmax.f32 %v749_v62, %v750_v5 }
 0x121   : > { %v689_v32 = vrot.slane %v2082_v24, 4  ;;  %v724_v33 = vsel %vm698_vm0, %v2082_v24, -inf  ;;  %v829_v34 = vadd.f32 %v828_v25, %v2082_v24  ;;  %v778_v14 = vsel %vm777_vm3, %v758_v8, %v751_v11 }
 0x122   : > { %v725_v27 = vmax.f32 %v721_v37, %v724_v33 }
 0x123   : > { %v726_v39 = vsel %vm698_vm0, %v689_v32, -inf  ;;  %v830_v40 = vrot.slane %v829_v34, 4 }
 0x124   : > { %v727_v42 = vmax.f32 %v723_v38, %v726_v39 }
 0x125   : > { %v831_v43 = vadd.f32 %v830_v40, %v829_v34 }
 0x126   : > { %v728_v45 = vmax.f32 %v725_v27, %v727_v42 }
 0x127   : > { %v832_v46 = vrot.slane %v831_v43, 2 }
 0x128   : > { %v732_v48 = vrot.slane %v728_v45, 2 }
 0x129   : > { %v833_v49 = vadd.f32 %v832_v46, %v831_v43 }
 0x12a   : > { %v738_v51 = vsel %vm733_vm2, %v728_v45, %v732_v48  ;;  %v739_v52 = vsel %vm735_vm1, %v728_v45, %v732_v48 }
 0x12b   : > { %v834_v53 = vrot.slane %v833_v49, 1  ;;  %v740_v54 = vrot.slane %v739_v52, 2  ;;  %v759_v56 = vsel %vm733_vm2, %v738_v51, -inf }
 0x12c   : > { %v760_v59 = vrot.slane %v759_v56, 4 }
 0x12d   : > { %v835_v60 = vadd.f32 %v834_v53, %v833_v49  ;;  %v766_v63 = vsel %vm733_vm2, %v740_v54, -inf }
 0x12e   : > { %v761_v0 = vmax.f32 %v759_v56, %v760_v59  ;;  %v767_v1 = vrot.slane %v766_v63, 4 }
 0x12f   : > { %836 = vrot.lane.b32.xlu0 %v835_v60, %s1762_s13 }
 0x130   : > { %v762_v3 = vrot.slane %v761_v0, 2  ;;  %v768_v4 = vmax.f32 %v766_v63, %v767_v1 }
 0x132   : > { %v763_v6 = vmax.f32 %v761_v0, %v762_v3  ;;  %v769_v7 = vrot.slane %v768_v4, 2 }
 0x134   : > { %v764_v9 = vrot.slane %v763_v6, 1  ;;  %v770_v10 = vmax.f32 %v768_v4, %v769_v7 }
 0x136   : > { %v765_v12 = vmax.f32 %v763_v6, %v764_v9  ;;  %v771_v13 = vrot.slane %v770_v10, 1 }
 0x138   : > { %v772_v15 = vmax.f32 %v770_v10, %v771_v13  ;;  %v780_v25 = vsel %vm779_vm4, %v765_v12, %v778_v14 }
 0x13a   : > { %v782_v26 = vsel %vm781_vm5, %v772_v15, %v780_v25 }
 0x13b   : > { %784 = vrot.lane.b32.xlu1 %v782_v26, %s1762_s13 }
 0x1a1   : > { %v837_v31 = vpop.permute.xlu0 %836 }
 0x1a2   : > { %v838_v32 = vadd.f32 %v837_v31, %v835_v60 }
 0x1a4   : > { %839 = vrot.lane.b32.xlu0 %v838_v32, %s1763_s16 }
 0x1ad   : > { %v785_v33 = vpop.permute.xlu1 %784 }
 0x1ae   : > { %v787_v34 = vrot.slane %v785_v33, 1  ;;  %v788_v36 = vrot.slane %v785_v33, 2  ;;  %v789_v37 = vrot.slane %v785_v33, 3  ;;  %v2106_v41 = vmax.f32 %v751_v11, %v785_v33  ;;  %v1011_v33 = vld [vmem:[#allocation10 + $0x70] sm:$0xff] }
 0x1b0   : > { %v2100_v38 = vmax.f32 %v758_v8, %v787_v34  ;;  %v2102_v39 = vmax.f32 %v765_v12, %v788_v36  ;;  %v2104_v40 = vmax.f32 %v772_v15, %v789_v37  ;;  %v1010_v34 = vld [vmem:[#allocation10 + $0x68] sm:$0xff]  ;;  %v1009_v36 = vld [vmem:[#allocation10 + $0x60] sm:$0xff]  ;;  %v1008_v37 = vld [vmem:[#allocation10 + $0x58] sm:$0xff] }
 0x1b2   : > { %v802_v27 = vrot.slane %v2100_v38, 7  ;;  %v804_v42 = vrot.slane %v2102_v39, 6  ;;  %v806_v44 = vrot.slane %v2104_v40, 5 }
 0x1b4   : > { %v803_v43 = vsel %vm777_vm3, %v802_v27, %v2106_v41  ;;  %v1007_v27 = vld [vmem:[#allocation10 + $0x50] sm:$0xff] }
 0x1b5   : > { %v805_v45 = vsel %vm779_vm4, %v804_v42, %v803_v43  ;;  %v1006_v42 = vld [vmem:[#allocation10 + $0x48] sm:$0xff] }
 0x1b6   : > { %v807_v46 = vsel %vm781_vm5, %v806_v44, %v805_v45 }
 0x1b7   : > { %809 = vrot.lane.b32.xlu2 %v807_v46, %s1763_s16 }
 0x211   : > { %v810_v45 = vpop.permute.xlu2 %809 }
 0x212   : > { %v812_v46 = vrot.slane %v810_v45, 1 }
 0x216   : > { %v840_v47 = vpop.permute.xlu0 %839 }
 0x217   : > { %v841_v48 = vadd.f32 %v840_v47, %v838_v32  ;;  %v1012_v32 = vld [vmem:[#allocation10 + $0x78] sm:$0xff]  ;;  %v820_v47 = vmax.f32 %v2100_v38, %v812_v46  ;;  %v1003_v46 = vld [vmem:[#allocation10 + $0x30] sm:$0xff] }
 0x218   : > { %1024 = vmatpush.msra.mxu2 %v1012_v32 }
 0x219   : > { %v842_v49 = vmul.f32 0.00390625, %v841_v48  ;;  %v819_v48 = vmax.f32 %v2106_v41, %v810_v45 }
 0x21a   : > { %1025 = vmatpush.msra.mxu2 %v1011_v33 }
 0x21b   : > { %v843_v50 = vperm.slane %v842_v49, 0  ;;  %v885_v49 = vrot.slane %v820_v47, 6 }
 0x21c   : > { %1026 = vmatpush.msra.mxu2 %v1010_v34 }
 0x21d   : > { %v844_v51 = vsub.f32 %v2032_v29, %v843_v50  ;;  %v845_v52 = vsub.f32 %v2030_v28, %v843_v50  ;;  %v846_v53 = vsub.f32 %v2034_v30, %v843_v50  ;;  %v847_v55 = vsub.f32 %v2039_v35, %v843_v50 }
 0x21e   : > { %v848_v59 = vsub.f32 %v2059_v58, %v843_v50  ;;  %v849_v63 = vsub.f32 %v2057_v57, %v843_v50  ;;  %v850_v2 = vsub.f32 %v2062_v61, %v843_v50  ;;  %v851_v5 = vsub.f32 %v2082_v24, %v843_v50  ;;  %1027 = vmatpush.msra.mxu2 %v1009_v36 }
 0x21f   : > { %v852_v54 = vmul.f32 %v844_v51, %v844_v51  ;;  %v853_v56 = vmul.f32 %v845_v52, %v845_v52  ;;  %v854_v60 = vmul.f32 %v846_v53, %v846_v53  ;;  %v855_v0 = vmul.f32 %v847_v55, %v847_v55  ;;  %v2132_v52 = vld [vmem:[#allocation8] sm:$0xff] }
 0x220   : > { %v856_v3 = vmul.f32 %v848_v59, %v848_v59  ;;  %v857_v6 = vmul.f32 %v849_v63, %v849_v63  ;;  %v858_v8 = vmul.f32 %v850_v2, %v850_v2  ;;  %v859_v10 = vmul.f32 %v851_v5, %v851_v5  ;;  %1028 = vmatpush.msra.mxu2 %v1008_v37 }
 0x221   : > { %v860_v62 = vadd.f32 %v853_v56, %v852_v54  ;;  %v884_v50 = vrot.slane %v819_v48, 7  ;;  %v813_v53 = vrot.slane %v810_v45, 2  ;;  %v814_v54 = vrot.slane %v810_v45, 3 }
 0x222   : > { %1029 = vmatpush.msra.mxu2 %v1007_v27  ;;  %v905_v56 = vperm.slane %v2132_v52, 0  ;;  %v910_v59 = vperm.slane %v2132_v52, 1  ;;  %v1004_v27 = vld [vmem:[#allocation10 + $0x38] sm:$0xff]  ;;  %v948_v45 = vperm.slane %v2132_v52, 5 }
 0x223   : > { %v861_v1 = vadd.f32 %v860_v62, %v854_v60  ;;  %v886_v51 = vsel %vm779_vm4, %v885_v49, %v884_v50  ;;  %v821_v38 = vmax.f32 %v2102_v39, %v813_v53  ;;  %v822_v41 = vmax.f32 %v2104_v40, %v814_v54  ;;  %v1485_v62 = vld [vmem:[%s2235_s6] ss:$0 sm:$0xff] }
 0x224   : > { %1030 = vmatpush.msra.mxu2 %v1006_v42  ;;  %v893_v55 = vsel %vm892_vm6, 0.0, %v886_v51  ;;  %v906_v63 = vmul.f32 0.0, %v905_v56  ;;  %v1002_v50 = vld [vmem:[#allocation10 + $0x28] sm:$0xff] }
 0x225   : > { %v862_v4 = vadd.f32 %v861_v1, %v855_v0  ;;  %v896_v60 = vsel %vm895_vm7, %v893_v55, 0.0  ;;  %v911_v0 = vmul.f32 0.0, %v910_v59  ;;  %v921_v1 = vperm.slane %v2132_v52, 2  ;;  %v1001_v55 = vld [vmem:[#allocation10 + $0x20] sm:$0xff] }
 0x226   : > { %v907_v2 = vmul.f32 %v905_v56, %v896_v60  ;;  %v888_v5 = vrot.slane %v822_v41, 6  ;;  %v949_v53 = vmul.f32 %v948_v45, %v896_v60  ;;  %v999_v41 = vld [vmem:[#allocation10 + $0x10] sm:$0xff] }
 0x227   : > { %v863_v7 = vadd.f32 %v862_v4, %v856_v3  ;;  %v912_v3 = vmul.f32 %v910_v59, %v896_v60  ;;  %v887_v4 = vrot.slane %v821_v38, 7  ;;  %v1000_v38 = vld [vmem:[#allocation10 + $0x18] sm:$0xff] }
 0x228   : > { %v909_v39 = vadd.f32 %v1485_v62, %v907_v2  ;;  %v959_v2 = vperm.slane %v2132_v52, 6 }
 0x229   : > { %v864_v9 = vadd.f32 %v863_v7, %v857_v6  ;;  %v908_v6 = vadd.f32 %v1485_v62, %v906_v63  ;;  %v915_v7 = vrot.slane %v911_v0, 1  ;;  %v889_v40 = vsel %vm779_vm4, %v888_v5, %v887_v4  ;;  %v567_v62 = vld [vmem:[#allocation5 + $0x78] sm:$0xff]  ;;  %v566_v63 = vld [vmem:[#allocation5 + $0x70] sm:$0xff] }
 0x22a   : > { %v953_v0 = vrot.slane %v949_v53, 2  ;;  %v998_v4 = vld [vmem:[#allocation10 + $0x8] sm:$0xff]  ;;  %572 = vmatpush.msra.mxu0 %v567_v62 }
 0x22b   : > { %v865_v11 = vadd.f32 %v864_v9, %v858_v8  ;;  %v922_v8 = vmul.f32 0.0, %v921_v1  ;;  %v916_v9 = vrot.slane %v912_v3, 1  ;;  %v964_v3 = vperm.slane %v2132_v52, 7  ;;  %v555_v62 = vld [vmem:[#allocation5 + $0x18] sm:$0xff] }
 0x22c   : > { %573 = vmatpush.msra.mxu0 %v566_v63  ;;  %v554_v63 = vld [vmem:[#allocation5 + $0x10] sm:$0xff] }
 0x22d   : > { %v866_v12 = vadd.f32 %v865_v11, %v859_v10  ;;  %v923_v10 = vmul.f32 %v921_v1, %v896_v60  ;;  %v919_v11 = vadd.f32 %v915_v7, %v908_v6  ;;  %v961_v7 = vmul.f32 0.0, %v959_v2 }
 0x22f   : > { %v867_v13 = vrot.slane %v866_v12, 4 }
 0x231   : > { %v868_v14 = vadd.f32 %v867_v13, %v866_v12  ;;  %v926_v12 = vrot.slane %v922_v8, 2  ;;  %v894_v13 = vsel %vm892_vm6, 0.0, %v889_v40  ;;  %v966_v8 = vmul.f32 0.0, %v964_v3 }
 0x232   : > { %v897_v32 = vsel %vm895_vm7, %v894_v13, 0.0 }
 0x233   : > { %v869_v15 = vrot.slane %v868_v14, 2  ;;  %v930_v33 = vadd.f32 %v926_v12, %v919_v11  ;;  %v950_v54 = vmul.f32 %v948_v45, %v897_v32  ;;  %v960_v40 = vmul.f32 %v959_v2, %v897_v32  ;;  %v1486_v11 = vld [vmem:[#allocation8 + $0x8] ss:$0 sm:$0xff]  ;;  %v563_v12 = vld [vmem:[#allocation5 + $0x58] sm:$0xff] }
 0x235   : > { %v870_v25 = vadd.f32 %v869_v15, %v868_v14  ;;  %v920_v14 = vadd.f32 %v916_v9, %v909_v39  ;;  %v932_v15 = vperm.slane %v2132_v52, 3  ;;  %v954_v1 = vrot.slane %v950_v54, 2  ;;  %v997_v39 = vld [vmem:[#allocation10] sm:$0xff]  ;;  %v564_v9 = vld [vmem:[#allocation5 + $0x60] sm:$0xff]  ;;  %v557_v54 = vld [vmem:[#allocation5 + $0x28] sm:$0xff] }
 0x237   : > { %v871_v26 = vrot.slane %v870_v25, 1  ;;  %v933_v36 = vmul.f32 %v932_v15, %v896_v60  ;;  %v934_v42 = vmul.f32 %v932_v15, %v897_v32  ;;  %v977_v15 = vmul.f32 0.0, %v1486_v11 }
 0x239   : > { %v872_v31 = vadd.f32 %v871_v26, %v870_v25  ;;  %v937_v25 = vperm.slane %v2132_v52, 4  ;;  %v927_v26 = vrot.slane %v923_v10, 2  ;;  %v935_v47 = vadd.f32 %v933_v36, %v930_v33  ;;  %v561_v33 = vld [vmem:[#allocation5 + $0x48] sm:$0xff] }
 0x23a   : > { %v965_v10 = vmul.f32 %v964_v3, %v897_v32  ;;  %v1488_v3 = vld [vmem:[%s2237_s8] ss:$0 sm:$0xff] }
 0x23b   : > { %873 = vrot.lane.b32.xlu1 %v872_v31, %s1762_s13  ;;  %v931_v34 = vadd.f32 %v927_v26, %v920_v14  ;;  %v938_v37 = vmul.f32 %v937_v25, %v896_v60  ;;  %v565_v60 = vld [vmem:[#allocation5 + $0x68] sm:$0xff]  ;;  %v970_v14 = vrot.slane %v966_v8, 1  ;;  %v1159_v8 = vld [vmem:[#allocation11 + $0x50] sm:$0xff] }
 0x23c   : > { %574 = vmatpush.msra.mxu0 %v565_v60  ;;  %v969_v26 = vrot.slane %v965_v10, 1 }
 0x23d   : > { %v936_v48 = vadd.f32 %v934_v42, %v931_v34  ;;  %v942_v49 = vrot.slane %v938_v37, 1  ;;  %v981_v37 = vrot.slane %v977_v15, 2  ;;  %v560_v42 = vld [vmem:[#allocation5 + $0x40] sm:$0xff] }
 0x23e   : > { %575 = vmatpush.msra.mxu0 %v564_v9  ;;  %v1158_v9 = vld [vmem:[#allocation11 + $0x48] sm:$0xff]  ;;  %v1155_v15 = vld [vmem:[#allocation11 + $0x30] sm:$0xff] }
 0x23f   : > { %v946_v56 = vadd.f32 %v942_v49, %v935_v47  ;;  %v559_v47 = vld [vmem:[#allocation5 + $0x38] sm:$0xff] }
 0x240   : > { %576 = vmatpush.msra.mxu0 %v563_v12 }
 0x241   : > { %v957_v5 = vadd.f32 %v953_v0, %v946_v56  ;;  %v553_v0 = vld [vmem:[#allocation5 + $0x8] sm:$0xff] }
 0x243   : > { %v962_v13 = vadd.f32 %v960_v40, %v957_v5 }
 0x245   : > { %v973_v34 = vadd.f32 %v969_v26, %v962_v13  ;;  %v1156_v13 = vld [vmem:[#allocation11 + $0x38] sm:$0xff]  ;;  %v1154_v26 = vld [vmem:[#allocation11 + $0x28] sm:$0xff] }
 0x2ad   : > { %v874_v43 = vpop.permute.xlu1 %873 }
 0x2ae   : > { %v2125_v44 = vadd.f32 %v874_v43, %v872_v31  ;;  %v1005_v31 = vld [vmem:[#allocation10 + $0x40] sm:$0xff]  ;;  %v939_v43 = vmul.f32 %v937_v25, %v897_v32 }
 0x2af   : > { %1031 = vmatpush.msra.mxu2 %v1005_v31  ;;  %v562_v25 = vld [vmem:[#allocation5 + $0x50] sm:$0xff]  ;;  %v976_v31 = vmul.f32 %v1486_v11, %v897_v32  ;;  %v1487_v32 = vld [vmem:[%s2240_s11] ss:$0 sm:$0xff] }
 0x2b0   : > { %876 = vrot.lane.b32.xlu2 %v2125_v44, %s1763_s16  ;;  %v943_v51 = vrot.slane %v939_v43, 1  ;;  %577 = vmatpush.msra.mxu0 %v562_v25  ;;  %v1157_v11 = vld [vmem:[#allocation11 + $0x40] sm:$0xff]  ;;  %s543_s16 = scalar_lea.vmem [#allocation13], %s1367_s9  ;;  %s1380_s9 = sshll.u32 %s1860_s15, 6 }
 0x2b1   : > { %1032 = vmatpush.msra.mxu2 %v1004_v27  ;;  %v980_v43 = vrot.slane %v976_v31, 2  ;;  %s1230_s29 = scalar_lea.hbm %s2266_s3, %s1380_s9  ;;  %s1231_s14 = sshll.u32 %s543_s16, 4  ;;  %s1232_s14 = int_to_ptr.vmem [resolvable:$true] %s1231_s14 }
 0x2b2   : > { %v947_v59 = vadd.f32 %v943_v51, %v936_v48  ;;  %578 = vmatpush.msra.mxu0 %v561_v33  ;;  %v558_v51 = vld [vmem:[#allocation5 + $0x30] sm:$0xff]  ;;  %s1233_s17 = sshll.u32 %s1230_s29, 4  ;;  %s1234_s17 = int_to_ptr.hbm [resolvable:$true] %s1233_s17 }
 0x2b3   : > { %1033 = vmatpush.msra.mxu2 %v1003_v46  ;;  %v992_v46 = vld [vmem:[%s2241_s12] sm:$0x1]  ;;  %v984_v48 = vadd.f32 %v980_v43, %v973_v34  ;;  %v1153_v33 = vld [vmem:[#allocation11 + $0x20] sm:$0xff]  ;;  %s1689_s23 = sshra.s32 %s1234_s17, 4  ;;  %s1690_s23 = int_to_ptr.hbm [resolvable:$true] %s1689_s23 }
 0x2b4   : > { %v958_v6 = vadd.f32 %v954_v1, %v947_v59  ;;  %579 = vmatpush.msra.mxu0 %v560_v42  ;;  %v556_v59 = vld [vmem:[#allocation5 + $0x20] sm:$0xff]  ;;  %s1691_s1 = scalar_lea.hbm %s1690_s23, 64  ;;  %p1696_p12 = scmp.lt.s32.totalorder %s1690_s23, %s2266_s3 }
 0x2b5   : > { %1034 = vmatpush.msra.mxu2 %v1002_v50  ;;  %v552_v1 = vld [vmem:[#allocation5] sm:$0xff]  ;;  %p1692_p1 = scmp.ne.s32.totalorder %s1690_s23, %s1691_s1  ;;  %p1697_p8 = scmp.lt.s32.totalorder %s1695_s7, %s1691_s1 }
 0x2b6   : > { %v963_v52 = vadd.f32 %v961_v7, %v958_v6  ;;  %580 = vmatpush.msra.mxu0 %v559_v47  ;;  %v1163_v6 = vld [vmem:[#allocation11 + $0x70] sm:$0xff] }
 0x2b7   : > { %1035 = vmatpush.msra.mxu2 %v1001_v55  ;;  %v990_v55 = vmul.f32 %v1487_v32, %v984_v48  ;;  %p1693_p3 = pnand %p1692_p1, %p1937_p13  ;;  %p1698_p7 = por %p1697_p8, %p1696_p12 }
 0x2b8   : > { %v974_v36 = vadd.f32 %v970_v14, %v963_v52  ;;  %581 = vmatpush.msra.mxu0 %v558_v51 }
 0x2b9   : > { %1036 = vmatpush.msra.mxu2 %v1000_v38  ;;  %p1694_p5 = pneg %p1693_p3 }
 0x2ba   : > { %v985_v49 = vadd.f32 %v981_v37, %v974_v36  ;;  %582 = vmatpush.msra.mxu0 %v557_v54  ;;  %v1152_v36 = vld [vmem:[#allocation11 + $0x18] sm:$0xff] }
 0x2bb   : > { %1037 = vmatpush.msra.mxu2 %v999_v41  ;;  %p1699_p9 = pnand %p1698_p7, %p1694_p5 }
 0x2bc   : > { %583 = vmatpush.msra.mxu0 %v556_v59 }
 0x2bd   : > { %1038 = vmatpush.msra.mxu2 %v998_v4 }
 0x2be   : > { %584 = vmatpush.msra.mxu0 %v555_v62 }
 0x2bf   : > { %1039 = vmatpush.msra.mxu2 %v997_v39 }
 0x2c0   : > { %585 = vmatpush.msra.mxu0 %v554_v63 }
 0x2c2   : > { %586 = vmatpush.msra.mxu0 %v553_v0 }
 0x2c4   : > { %587 = vmatpush.msra.mxu0 %v552_v1 }
 0x2c5   : > { %588 = vmatmul.f32.vlgmr.msra.gmra.mxu0 %v1996_v16 }
 0x2cd   : > { %591 = vmatmul.f32.gmra.mxu0 %v2000_v17 }
 0x2d5   : > { %594 = vmatmul.f32.gmra.mxu0 %v2004_v18  ;;  %v1164_v18 = vld [vmem:[#allocation11 + $0x78] sm:$0xff] }
 0x2d6   : > { %1169 = vmatpush.msra.mxu3 %v1164_v18 }
 0x2d8   : > { %1170 = vmatpush.msra.mxu3 %v1163_v6 }
 0x2dd   : > { %597 = vmatmul.f32.gmra.mxu0 %v2008_v19 }
 0x2e5   : > { %600 = vmatmul.f32.gmra.mxu0 %v2012_v20  ;;  %v1162_v20 = vld [vmem:[#allocation11 + $0x68] sm:$0xff] }
 0x2e6   : > { %1171 = vmatpush.msra.mxu3 %v1162_v20 }
 0x2ed   : > { %603 = vmatmul.f32.gmra.mxu0 %v2016_v21  ;;  %v1161_v21 = vld [vmem:[#allocation11 + $0x60] sm:$0xff] }
 0x2ee   : > { %1172 = vmatpush.msra.mxu3 %v1161_v21 }
 0x2f5   : > { %606 = vmatmul.f32.gmra.mxu0 %v2020_v22  ;;  %v1160_v22 = vld [vmem:[#allocation11 + $0x58] sm:$0xff] }
 0x2f6   : > { %1173 = vmatpush.msra.mxu3 %v1160_v22 }
 0x2f8   : > { %1174 = vmatpush.msra.mxu3 %v1159_v8 }
 0x2fa   : > { %1175 = vmatpush.msra.mxu3 %v1158_v9 }
 0x2fc   : > { %1176 = vmatpush.msra.mxu3 %v1157_v11 }
 0x2fd   : > { %609 = vmatmul.f32.gmra.mxu0 %v2024_v23 }
 0x2fe   : > { %1177 = vmatpush.msra.mxu3 %v1156_v13 }
 0x300   : > { %1178 = vmatpush.msra.mxu3 %v1155_v15 }
 0x302   : > { %1179 = vmatpush.msra.mxu3 %v1154_v26 }
 0x304   : > { %1180 = vmatpush.msra.mxu3 %v1153_v33 }
 0x306   : > { %1181 = vmatpush.msra.mxu3 %v1152_v36 }
 0x30a   : > { %v877_v27 = vpop.permute.xlu2 %876 }
 0x30b   : > { %v878_v45 = vadd.f32 %v877_v27, %v2125_v44  ;;  %v991_v44 = vmul.f32 %v1487_v32, %v985_v49  ;;  %v1151_v27 = vld [vmem:[#allocation11 + $0x10] sm:$0xff] }
 0x30c   : > { %1182 = vmatpush.msra.mxu3 %v1151_v27 }
 0x30d   : > { %v879_v50 = vmul.f32 0.003921569, %v878_v45  ;;  %v1150_v45 = vld [vmem:[#allocation11 + $0x8] sm:$0xff] }
 0x30e   : > { %1183 = vmatpush.msra.mxu3 %v1150_v45 }
 0x30f   : > { %v993_v53 = vmul.f32 %v992_v46, %v879_v50  ;;  %v1149_v46 = vld [vmem:[#allocation11] sm:$0xff] }
 0x310   : > { %1184 = vmatpush.msra.mxu3 %v1149_v46 }
 0x311   : > { %v994_v56 = vperm.slane %v993_v53, 0 }
 0x313   : > { %v995_v38 = vadd.f32 %v994_v56, %v990_v55  ;;  %v996_v41 = vadd.f32 %v994_v56, %v991_v44 }
 0x315   : > { %1019 = vst [vmem:[#allocation1] ss:$4 sm:$0xff] %v995_v38  ;;  %v2173_v38 = vld [vmem:[%s2231_s2] ss:$0 sm:$0xff] }
 0x316   : > { %1021 = vst [vmem:[#allocation1 + $0x1] ss:$4 sm:$0xff] %v996_v41 }
 0x31d   : > { %v1022_v2 = vld.sshfl [vmem:[#allocation1] sm:$0xff pattern:$0x73625140] }
 0x31e   : > { %1040 = vmatmul.f32.vlgmr.msra.gmra.mxu2 %v1022_v2 }
 0x342   : > { %v589_v32 = vpop.f32.mrf.mxu0 }
 0x343   : > { %v590_v41 = vadd.f32 %v2173_v38, %v589_v32 }
 0x34a   : > { %v592_v59 = vpop.f32.mrf.mxu0 }
 0x352   : > { %v595_v0 = vpop.f32.mrf.mxu0 }
 0x353   : > { %v596_v6 = vadd.f32 %v2173_v38, %v595_v0 }
 0x3a1   : > { %v1041_v4 = vpop.f32.mrf.mxu2 }
 0x3a2   : > { %v1042_v16 = vadd.f32 %v1488_v3, %v1041_v4 }
 0x3a4   : > { %v1045_v60 = vmul.f32 0.70710677, %v1042_v16  ;;  %v1044_v51 = vmul.f32 0.5, %v1042_v16  ;;  %v593_v16 = vadd.f32 %v2173_v38, %v592_v59 }
 0x3a6   : > { %v1046_v17 = vand.u32 2147483647, %v1045_v60  ;;  %vm1065_vm8 = vcmp.ge.f32.partialorder %v1045_v60, 0.0 }
 0x3a8   : > { %v1047_v5 = vmul.f32 0.3275911, %v1046_v17  ;;  %v1059_v7 = vsub.f32 0.0, %v1046_v17 }
 0x3aa   : > { %v1048_v19 = vadd.f32 1.0, %v1047_v5  ;;  %v1060_v10 = vmul.f32 %v1059_v7, %v1046_v17 }
 0x3ac   : > { %1491 = vrcp.f32 %v1048_v19  ;;  %v1061_v14 = vmul.f32 1.442695, %v1060_v10  ;;  %v598_v19 = vpop.f32.mrf.mxu0 }
 0x3ad   : > { %v599_v7 = vadd.f32 %v2173_v38, %v598_v19 }
 0x3ae   : > { %1493 = vpow2.f32 %v1061_v14 }
 0x3b2   : > { %v1492_v23 = vpop.eup %1491 }
 0x3b3   : > { %v1050_v39 = vmul.f32 1.0614054, %v1492_v23 }
 0x3b4   : > { %v1494_v43 = vpop.eup %1493  ;;  %v601_v22 = vpop.f32.mrf.mxu0 }
 0x3b5   : > { %v1051_v40 = vadd.f32 -1.4531521, %v1050_v39  ;;  %v602_v9 = vadd.f32 %v2173_v38, %v601_v22 }
 0x3b7   : > { %v1052_v12 = vmul.f32 %v1492_v23, %v1051_v40 }
 0x3b9   : > { %v1053_v52 = vadd.f32 1.4214138, %v1052_v12 }
 0x3bb   : > { %v1054_v25 = vmul.f32 %v1492_v23, %v1053_v52 }
 0x3bc   : > { %v604_v10 = vpop.f32.mrf.mxu0 }
 0x3bd   : > { %v1055_v31 = vadd.f32 -0.28449672, %v1054_v25 }
 0x3bf   : > { %v1056_v34 = vmul.f32 %v1492_v23, %v1055_v31 }
 0x3c1   : > { %v1057_v37 = vadd.f32 0.2548296, %v1056_v34 }
 0x3c3   : > { %v1058_v42 = vmul.f32 %v1492_v23, %v1057_v37 }
 0x3c4   : > { %v607_v13 = vpop.f32.mrf.mxu0 }
 0x3c5   : > { %v1063_v47 = vmul.f32 %v1494_v43, %v1058_v42  ;;  %v608_v15 = vadd.f32 %v2173_v38, %v607_v13 }
 0x3c7   : > { %v1064_v48 = vsub.f32 1.0, %v1063_v47 }
 0x3c9   : > { %v1066_v49 = vsub.f32 0.0, %v1064_v48 }
 0x3cb   : > { %v1067_v50 = vsel %vm1065_vm8, %v1064_v48, %v1066_v49 }
 0x3cc   : > { %v1068_v53 = vadd.f32 1.0, %v1067_v50  ;;  %v610_v31 = vpop.f32.mrf.mxu0 }
 0x3ce   : > { %v1069_v54 = vmul.f32 %v1068_v53, %v1044_v51 }
 0x3d0   : > { %v1071_v55 = vrot.slane %v1069_v54, 1  ;;  %v1074_v44 = vperm.slane %v1069_v54, 0  ;;  %v1072_v3 = vrot.slane %v1069_v54, 2  ;;  %v1073_v4 = vrot.slane %v1069_v54, 3 }
 0x3d2   : > { %v1075_v56 = vperm.slane %v1071_v55, 0  ;;  %1078 = vst [vmem:[#allocation1] ss:$4 sm:$0xff] %v1074_v44  ;;  %v1076_v17 = vperm.slane %v1072_v3, 0  ;;  %v1077_v5 = vperm.slane %v1073_v4, 0 }
 0x3d3   : > { %1082 = vst [vmem:[#allocation1 + $0x2] ss:$4 sm:$0xff] %v1074_v44 }
 0x3d4   : > { %1080 = vst [vmem:[#allocation1 + $0x1] ss:$4 sm:$0xff] %v1075_v56 }
 0x3d5   : > { %1084 = vst [vmem:[#allocation1 + $0x3] ss:$4 sm:$0xff] %v1075_v56 }
 0x3d6   : > { %1086 = vst [vmem:[#allocation1 + $0x20] ss:$4 sm:$0xff] %v1074_v44 }
 0x3d7   : > { %1088 = vst [vmem:[#allocation1 + $0x21] ss:$4 sm:$0xff] %v1075_v56 }
 0x3d8   : > { %1090 = vst [vmem:[#allocation1 + $0x22] ss:$4 sm:$0xff] %v1074_v44 }
 0x3d9   : > { %1092 = vst [vmem:[#allocation1 + $0x23] ss:$4 sm:$0xff] %v1075_v56 }
 0x3dc   : > { %v1093_v62 = vld.sshfl [vmem:[#allocation1] sm:$0xff pattern:$0x73625140] }
 0x3dd   : > { %1095 = vst [vmem:[#allocation1] ss:$4 sm:$0xff] %v1074_v44  ;;  %v1133_v63 = vmul.f32 %v1093_v62, %v2032_v29 }
 0x3de   : > { %1096 = vst [vmem:[#allocation1 + $0x1] ss:$4 sm:$0xff] %v1075_v56 }
 0x3df   : > { %1097 = vst [vmem:[#allocation1 + $0x2] ss:$4 sm:$0xff] %v1074_v44  ;;  %v1141_v1 = vadd.f32 %v1133_v63, %v590_v41 }
 0x3e0   : > { %v1094_v2 = vld.sshfl [vmem:[#allocation1 + $0x20] sm:$0xff pattern:$0x73625140]  ;;  %1098 = vst [vmem:[#allocation1 + $0x3] ss:$4 sm:$0xff] %v1075_v56 }
 0x3e1   : > { %1099 = vst [vmem:[#allocation1 + $0x20] ss:$4 sm:$0xff] %v1074_v44  ;;  %1185 = vmatmul.f32.vlgmr.msra.gmra.mxu3 %v1141_v1  ;;  %v1134_v60 = vmul.f32 %v1094_v2, %v2030_v28 }
 0x3e2   : > { %1100 = vst [vmem:[#allocation1 + $0x21] ss:$4 sm:$0xff] %v1075_v56 }
 0x3e3   : > { %1101 = vst [vmem:[#allocation1 + $0x22] ss:$4 sm:$0xff] %v1074_v44  ;;  %v1142_v29 = vadd.f32 %v1134_v60, %v593_v16 }
 0x3e4   : > { %1102 = vst [vmem:[#allocation1 + $0x23] ss:$4 sm:$0xff] %v1075_v56 }
 0x3e7   : > { %v1103_v18 = vld.sshfl [vmem:[#allocation1] sm:$0xff pattern:$0x73625140] }
 0x3e8   : > { %1105 = vst [vmem:[#allocation1] ss:$4 sm:$0xff] %v1076_v17  ;;  %v1135_v20 = vmul.f32 %v1103_v18, %v2034_v30 }
 0x3e9   : > { %1188 = vmatmul.f32.gmra.mxu3 %v1142_v29  ;;  %1106 = vst [vmem:[#allocation1 + $0x1] ss:$4 sm:$0xff] %v1077_v5 }
 0x3ea   : > { %1107 = vst [vmem:[#allocation1 + $0x2] ss:$4 sm:$0xff] %v1076_v17  ;;  %v1143_v28 = vadd.f32 %v1135_v20, %v596_v6 }
 0x3eb   : > { %1108 = vst [vmem:[#allocation1 + $0x3] ss:$4 sm:$0xff] %v1077_v5  ;;  %v1104_v21 = vld.sshfl [vmem:[#allocation1 + $0x20] sm:$0xff pattern:$0x73625140] }
 0x3ec   : > { %1109 = vst [vmem:[#allocation1 + $0x20] ss:$4 sm:$0xff] %v1076_v17  ;;  %v1136_v8 = vmul.f32 %v1104_v21, %v2039_v35  ;;  %v605_v35 = vadd.f32 %v2173_v38, %v604_v10 }
 0x3ed   : > { %1110 = vst [vmem:[#allocation1 + $0x21] ss:$4 sm:$0xff] %v1077_v5 }
 0x3ee   : > { %1111 = vst [vmem:[#allocation1 + $0x22] ss:$4 sm:$0xff] %v1076_v17  ;;  %v1144_v30 = vadd.f32 %v1136_v8, %v599_v7 }
 0x3ef   : > { %1112 = vst [vmem:[#allocation1 + $0x23] ss:$4 sm:$0xff] %v1077_v5 }
 0x3f1   : > { %1191 = vmatmul.f32.gmra.mxu3 %v1143_v28 }
 0x3f2   : > { %v1113_v23 = vld.sshfl [vmem:[#allocation1] sm:$0xff pattern:$0x73625140] }
 0x3f3   : > { %1115 = vst [vmem:[#allocation1] ss:$4 sm:$0xff] %v1076_v17  ;;  %v1137_v40 = vmul.f32 %v1113_v23, %v2059_v58  ;;  %v611_v58 = vadd.f32 %v2173_v38, %v610_v31 }
 0x3f4   : > { %1116 = vst [vmem:[#allocation1 + $0x1] ss:$4 sm:$0xff] %v1077_v5 }
 0x3f5   : > { %1117 = vst [vmem:[#allocation1 + $0x2] ss:$4 sm:$0xff] %v1076_v17  ;;  %v1145_v11 = vadd.f32 %v1137_v40, %v602_v9 }
 0x3f6   : > { %1118 = vst [vmem:[#allocation1 + $0x3] ss:$4 sm:$0xff] %v1077_v5  ;;  %v1114_v39 = vld.sshfl [vmem:[#allocation1 + $0x20] sm:$0xff pattern:$0x73625140] }
 0x3f7   : > { %1119 = vst [vmem:[#allocation1 + $0x20] ss:$4 sm:$0xff] %v1076_v17  ;;  %v1138_v12 = vmul.f32 %v1114_v39, %v2057_v57  ;;  %v1490_v57 = vld [vmem:[%s2239_s10] ss:$0 sm:$0xff] }
 0x3f8   : > { %1120 = vst [vmem:[#allocation1 + $0x21] ss:$4 sm:$0xff] %v1077_v5 }
 0x3f9   : > { %1194 = vmatmul.f32.gmra.mxu3 %v1144_v30  ;;  %1121 = vst [vmem:[#allocation1 + $0x22] ss:$4 sm:$0xff] %v1076_v17  ;;  %v1146_v52 = vadd.f32 %v1138_v12, %v605_v35 }
 0x3fa   : > { %1122 = vst [vmem:[#allocation1 + $0x23] ss:$4 sm:$0xff] %v1077_v5 }
 0x3fd   : > { %v1123_v14 = vld.sshfl [vmem:[#allocation1] sm:$0xff pattern:$0x73625140] }
 0x3fe   : > { %v1139_v25 = vmul.f32 %v1123_v14, %v2062_v61 }
 0x400   : > { %v1147_v26 = vadd.f32 %v1139_v25, %v608_v15 }
 0x401   : > { %1197 = vmatmul.f32.gmra.mxu3 %v1145_v11  ;;  %v1124_v33 = vld.sshfl [vmem:[#allocation1 + $0x20] sm:$0xff pattern:$0x73625140] }
 0x402   : > { %v1140_v34 = vmul.f32 %v1124_v33, %v2082_v24 }
 0x404   : > { %v1148_v36 = vadd.f32 %v1140_v34, %v611_v58 }
 0x409   : > { %1200 = vmatmul.f32.gmra.mxu3 %v1146_v52 }
 0x411   : > { %1203 = vmatmul.f32.gmra.mxu3 %v1147_v26 }
 0x419   : > { %1206 = vmatmul.f32.gmra.mxu3 %v1148_v36 }
 0x464   : > { %v1186_v37 = vpop.f32.mrf.mxu3 }
 0x465   : > { %v1187_v27 = vadd.f32 %v1490_v57, %v1186_v37 }
 0x467   : > { %1210 = vst [vmem:[%s543_s16] sm:$0xff] %v1187_v27 }
 0x46c   : > { %v1189_v61 = vpop.f32.mrf.mxu3 }
 0x46d   : > { %v1190_v42 = vadd.f32 %v1490_v57, %v1189_v61 }
 0x46f   : > { %1211 = vst [vmem:[%s543_s16 + $0x8] sm:$0xff] %v1190_v42 }
 0x474   : > { %v1192_v43 = vpop.f32.mrf.mxu3 }
 0x475   : > { %v1193_v45 = vadd.f32 %v1490_v57, %v1192_v43 }
 0x477   : > { %1212 = vst [vmem:[%s543_s16 + $0x10] sm:$0xff] %v1193_v45 }
 0x47c   : > { %v1195_v46 = vpop.f32.mrf.mxu3 }
 0x47d   : > { %v1196_v24 = vadd.f32 %v1490_v57, %v1195_v46 }
 0x47f   : > { %1213 = vst [vmem:[%s543_s16 + $0x18] sm:$0xff] %v1196_v24 }
 0x484   : > { %v1198_v47 = vpop.f32.mrf.mxu3 }
 0x485   : > { %v1199_v48 = vadd.f32 %v1490_v57, %v1198_v47 }
 0x487   : > { %1214 = vst [vmem:[%s543_s16 + $0x20] sm:$0xff] %v1199_v48 }
 0x48c   : > { %v1201_v49 = vpop.f32.mrf.mxu3 }
 0x48d   : > { %v1202_v32 = vadd.f32 %v1490_v57, %v1201_v49 }
 0x48f   : > { %1215 = vst [vmem:[%s543_s16 + $0x28] sm:$0xff] %v1202_v32 }
 0x494   : > { %v1204_v50 = vpop.f32.mrf.mxu3 }
 0x495   : > { %v1205_v51 = vadd.f32 %v1490_v57, %v1204_v50 }
 0x497   : > { %1216 = vst [vmem:[%s543_s16 + $0x30] sm:$0xff] %v1205_v51 }
 0x49c   : > { %v1207_v53 = vpop.f32.mrf.mxu3 }
 0x49d   : > { %v1208_v54 = vadd.f32 %v1490_v57, %v1207_v53 }
 0x49f   : > { %1217 = vst [vmem:[%s543_s16 + $0x38] sm:$0xff] %v1208_v54 }
 0x4a0   : > { %1702 = shalt.err (!%p1699_p9)
}
 0x4a1   : > { %s1764_s20 = smov 128   ;;  %s1765_s16 = smov 8  }
 0x4a2   : > { %1403 = dma.vmem_to_hbm [thread:$0]  (%p1937_p13), %s1232_s14, 1024, %s1234_s17, %s1219_s21, %s1764_s20, %s1764_s20, %s1765_s16  }
 0x4a3 PF: > { %s1248_s22 = sand.u32 1, %s1741_s25   ;;  %p2267_p10 = scmp.ge.s32.totalorder %s1753_s28, 2 }
 0x4a4   : > { %s1249_s24 = scalar_lea.sflag [#allocation4], %s1248_s22 }
 0x4a5   : > { %p1426_p11 = pnand %p2267_p10, %p1942_p4 }
 0x4a7   : > { %p1427_p0 = pneg %p1426_p11 }
 0x4a9   : > { %1736 = dma.done.wait (%p1427_p0), %s1249_s24, 1024  }
 0x4aa   : > { %1738 = vsyncadd (%p1427_p0), %s1249_s24, 4294966272  ;;  %s2268_s29 = sld [smem:[#allocation19_spill]]  ;;  %p29_p2 = scmp.ge.s32.totalorder %s1917_s30, 4  }
 0x4ab   : > { %s2269_s25 = smov %s1745_s26  ;;  %s2270_s26 = smov %s1749_s27 }
 0x4ac   : > { %s2272_s28 = smov %s1917_s30  ;;  %31 = sbr.rel (!%p29_p2) target bundleno = 15 (0xf), region = 145 }
 0x4b0   : > { %s2271_s27 = smov %s2268_s29 }
 0x4b1   :  { %1255 = vsyncpa [#allocation3], 1 }
 0x4b2   :  { %1257 = vsyncpa [#allocation3 + $0x1], 1 }
 0x4b3   :  { %1258 = vsyncpa [#allocation6], 1 }
 0x4b4   :  { %1259 = vsyncpa [#allocation9], 1 }
 0x4b5   :  { %1260 = vsyncpa [#allocation12], 1 }
 0x4b6   :  { %1261 = vsyncpa [#allocation4], 1 }
 0x4b7   :  { %1263 = vsyncpa [#allocation4 + $0x1], 1 }

</bundles_post_ra>
